<compile_context>
chip_gen: v6e
topology: v6e:2x2x1
jax: 0.10.0
libtpu: 0.0.40
codegen_flags: <defaults>
</compile_context>

<pallas_src>
import jax
import jax.numpy as jnp
from jax.experimental import pallas as pl
from jax.experimental.pallas import tpu as pltpu

KS = 3  # kernel_sizes (module default); the fused-tap layout assumes 3.


def _final_height(L):
    h = L - (KS - 1)
    while h > 2:
        h = (h - 2) // 2 + 1
    return h


def _pyramid(L, Lp):
    """List of (valid_height, slab_stride) per conv level, plus final stride."""
    h, S = L - (KS - 1), Lp
    levels = [(h, S)]
    while h > 2:
        h, S = (h - 2) // 2 + 1, S // 2
        levels.append((h, S))
    return levels, S


def _default_tb(B, Lp, E, Fdim):
    """Largest batch-tile that keeps >=2 grid steps (v7x's 2 TCs) within a VMEM
    budget that also fits v7x's 64 MiB; falls back to fewer/fatter steps."""
    per_sample = Lp * (4 * E + 52 * Fdim)        # ~bf16 emb (x2 buf) + live f32 tiles
    cap = max(1, (48 << 20) // per_sample)
    divs = [d for d in range(1, B + 1)
            if B % d == 0 and d <= cap and (B // d == 1 or (d * Lp) % 8 == 0)]
    if not divs:
        return 1
    multi = [d for d in divs if B // d >= 2]
    return max(multi) if multi else max(divs)


# --------------------------------- wrapper ----------------------------------

def dpcnn_forward(emb, wr, br, wc, bc, bn_s, bn_b, wcls, bcls, *, tb=None):
    """emb: [B, L, E] f32 (embedding lookup done outside).  Conv weights in
    [k, Cin, Cout] layout; bn_s/bn_b are eval-mode folded BatchNorm scale/shift."""
    B, L, E = emb.shape
    Fdim = wc.shape[2]
    C = wcls.shape[1]

    if _final_height(L) != 1:
        raise ValueError(
            f"seq_length={L} leaves final feature height {_final_height(L)}; "
            "PyTorch squeeze()+Linear(num_filters) requires height 1")

    Lp = int(pl.next_power_of_2(L))       # per-sample slab stride at level 0
    levels, S_fin = _pyramid(L, Lp)

    if tb is None:
        tb = _default_tb(B, Lp, E, Fdim)
    if B % tb != 0:
        raise ValueError(f"batch {B} must be divisible by samples-per-step tb={tb}")
    G = B // tb
    if G > 1 and (tb * Lp) % 8 != 0:
        raise ValueError("tb*next_pow2(L) must be a multiple of 8 with multiple grid steps")

    # Fuse the 3 conv taps along the output (lane) axis -> one MXU op per conv.
    wrcat = jnp.concatenate([wr[0], wr[1], wr[2]], axis=1).astype(jnp.bfloat16)  # [E, 3F]
    wcat = jnp.concatenate([wc[0], wc[1], wc[2]], axis=1).astype(jnp.bfloat16)   # [F, 3F]

    # 'same'-conv pad rows pass BN+ReLU as relu(bn_b); precompute their conv
    # contribution in full f32 precision (matches the kernel's f32 accumulation).
    HI = jax.lax.Precision.HIGHEST
    cpad = jnp.maximum(bn_b, 0.0)                              # [1, F]
    e_top = jnp.dot(cpad, wc[0], precision=HI)                 # top pad row, tap 0
    e_bot = jnp.dot(cpad, wc[2], precision=HI)                 # bottom pad row, tap 2

    # Lane-dense classifier/output: pad class dim up to a multiple of 128.
    CP = ((C + 127) // 128) * 128
    wcls_p = jnp.zeros((Fdim, CP), jnp.float32).at[:, :C].set(wcls)
    bcls_p = jnp.zeros((1, CP), jnp.float32).at[:, :C].set(bcls)

    # Stream the embedding as bf16 slabs of Lp rows per sample (half the DMA
    # bytes of f32; it feeds a bf16 MXU matmul anyway).
    emb_p = jnp.pad(emb, ((0, 0), (0, Lp - L), (0, 0))) if Lp != L else emb
    emb2 = emb_p.reshape(B * Lp, E).astype(jnp.bfloat16)

    R = tb * S_fin          # classifier rows per grid step; row b*S_fin = sample b

    def kernel(emb_ref, wrcat_ref, br_ref, wcat_ref, bc_ref, bns_ref, bnb_ref,
               et_ref, eb_ref, wcls_ref, bcls_ref, out_ref, mbuf_ref):
        # Hoist all parameter reads out of the (trace-time-unrolled) pyramid.
        wcat_v = wcat_ref[...]
        br_v, bc_v = br_ref[...], bc_ref[...]
        bn_sv, bn_bv = bns_ref[...], bnb_ref[...]
        et_v, eb_v = et_ref[...], eb_ref[...]

        def roll_rows(v, shift):
            # jnp.roll semantics along the sublane axis; XLU rotate when the
            # row count is tile-aligned, tiny slice/concat fallback otherwise.
            hh = v.shape[0]
            shift = shift % hh
            if shift == 0:
                return v
            if hh % 8 == 0:
                return pltpu.roll(v, shift, axis=0)
            return jnp.concatenate([v[hh - shift:], v[:hh - shift]], axis=0)

        def level_masks(h, S):
            # Per-sample local row index; S is a power of two -> cheap AND.
            hh = tb * S
            lidx = jax.lax.broadcasted_iota(jnp.int32, (hh, Fdim), 0) & (S - 1)
            return lidx == 0, lidx == (h - 1), lidx

        def conv_same(v, h, first, last):
            """padding1 -> BN -> ReLU -> conv on a stacked [tb*S, F] slab tile."""
            z = jnp.maximum(v * bn_sv + bn_bv, 0.0)
            p = jnp.dot(z.astype(jnp.bfloat16), wcat_v,
                        preferred_element_type=jnp.float32)        # [tb*S, 3F]
            p0, p1, p2 = p[:, :Fdim], p[:, Fdim:2 * Fdim], p[:, 2 * Fdim:]
            if h == 1:
                return p1 + et_v + eb_v + bc_v
            a = jnp.where(first, et_v, roll_rows(p0, 1))            # w0.z[i-1] / top pad
            b2 = jnp.where(last, eb_v, roll_rows(p2, -1))           # w2.z[i+1] / bottom pad
            return p1 + a + b2 + bc_v

        def pool(v, S, padrow):
            """padding2 + MaxPool2d((3,1), stride=2): shifted max + ONE global
            stride-2 read (slab stride halves exactly each level)."""
            hh = tb * S
            s1 = roll_rows(v, -1)
            s2 = jnp.where(padrow, 0.0, roll_rows(v, -2))           # bottom zero pad
            mbuf_ref[pl.ds(0, hh), :] = jnp.maximum(jnp.maximum(v, s1), s2)
            return mbuf_ref[pl.ds(0, tb * (S // 2), stride=2), :]

        # Region embedding: Conv2d(1, F, (3, E)) == valid 1-D conv over seq;
        # one stacked matmul then a 3-tap shifted sum (no per-sample compaction).
        pr = jnp.dot(emb_ref[...], wrcat_ref[...],
                     preferred_element_type=jnp.float32)            # [tb*Lp, 3F]
        x = (pr[:, :Fdim]
             + roll_rows(pr[:, Fdim:2 * Fdim], -1)
             + roll_rows(pr[:, 2 * Fdim:], -2)) + br_v
        h, S = L - (KS - 1), Lp

        first = last = lidx = None
        if h > 1:
            first, last, lidx = level_masks(h, S)
        x = conv_same(x, h, first, last)   # two 'same' convs (shared weights)
        x = conv_same(x, h, first, last)

        # repeated downsampling blocks (static shapes -> unrolled at trace time)
        while h > 2:
            padrow = lidx == (h - 2)
            px = pool(x, S, padrow)
            h, S = (h - 2) // 2 + 1, S // 2
            if h > 1:
                first, last, lidx = level_masks(h, S)
            y = conv_same(px, h, first, last)
            y = conv_same(y, h, first, last)
            x = y + px

        # h == 1 here (guarded in the wrapper); row b*S of x is sample b.
        # TODO(synk): dropout is inference-mode identity; BatchNorm uses eval-mode
        #             folded scale/shift (training-mode batch stats not reproduced).
        logits = jnp.dot(x, wcls_ref[...],
                         preferred_element_type=jnp.float32) + bcls_ref[...]
        out_ref[0] = logits                                         # [tb*S_fin, CP]

    def full(a):
        return pl.BlockSpec(a.shape, lambda g, _nd=a.ndim: (0,) * _nd)

    # Advisory cost estimate + explicit VMEM budget (the scoped default can
    # silently cap the tile size well below physical VMEM).
    flops_step = 2 * (tb * Lp) * E * (3 * Fdim)                       # region conv
    flops_step += sum(2 * 2 * (tb * S) * Fdim * (3 * Fdim) for _h, S in levels)
    flops_step += 2 * R * Fdim * CP                                   # classifier
    param_bytes = (wrcat.size + wcat.size) * 2 + (
        br.size + bc.size + bn_s.size + bn_b.size + e_top.size + e_bot.size
        + wcls_p.size + bcls_p.size) * 4
    cost = pl.CostEstimate(flops=int(G * flops_step), transcendentals=0,
                           bytes_accessed=int(emb2.size * 2 + param_bytes
                                              + G * R * CP * 4))
    hh0 = tb * Lp
    vmem_est = (2 * hh0 * E * 2                   # double-buffered bf16 emb block
                + max(8, hh0) * Fdim * 4          # pooling scratch
                + 13 * hh0 * Fdim * 4             # live f32 tiles at the widest level
                + 2 * param_bytes + 2 * R * CP * 4)
    vmem_limit = int(min(max(2 * vmem_est, 32 << 20), 128 << 20))

    out = pl.pallas_call(
        kernel,
        out_shape=jax.ShapeDtypeStruct((G, R, CP), jnp.float32),
        grid_spec=pltpu.PrefetchScalarGridSpec(
            num_scalar_prefetch=0,
            grid=(G,),
            in_specs=[
                pl.BlockSpec((tb * Lp, E), lambda g: (g, 0)),
                full(wrcat), full(br), full(wcat), full(bc),
                full(bn_s), full(bn_b), full(e_top), full(e_bot),
                full(wcls_p), full(bcls_p),
            ],
            out_specs=pl.BlockSpec((1, R, CP), lambda g: (g, 0, 0)),
            scratch_shapes=[pltpu.VMEM((max(8, tb * Lp), Fdim), jnp.float32)],
        ),
        compiler_params=pltpu.CompilerParams(
            dimension_semantics=("parallel",),
            vmem_limit_bytes=vmem_limit),
        cost_estimate=cost,
    )(emb2, wrcat, br, wcat, bc, bn_s, bn_b, e_top, e_bot, wcls_p, bcls_p)

    # Row 0 of each sample's final slab is the single valid feature row.
    return out.reshape(B, S_fin, CP)[:, 0, :C]


# ---------------------------- pure-JAX reference -----------------------------

def dpcnn_ref(emb, wr, br, wc, bc, bn_s, bn_b, wcls, bcls):
    HI = jax.lax.Precision.HIGHEST

    def conv3(x, w, bias):                      # x: [B, H, Cin]
        h = x.shape[1] - (KS - 1)
        out = sum(jnp.einsum('bhc,cd->bhd', x[:, k:k + h], w[k], precision=HI)
                  for k in range(KS))
        return out + bias

    def pad(x, t, b):
        return jnp.pad(x, ((0, 0), (t, b), (0, 0)))

    def bnrelu(x):
        return jnp.maximum(x * bn_s + bn_b, 0.0)

    def pool(x):
        xp = pad(x, 0, KS - 2)
        oh = (xp.shape[1] - KS) // 2 + 1
        return jnp.stack([jnp.max(xp[:, 2 * i:2 * i + KS], axis=1) for i in range(oh)],
                         axis=1)

    x = conv3(emb, wr, br)
    for _ in range(2):
        x = conv3(bnrelu(pad(x, 1, 1)), wc, bc)
    while x.shape[1] > 2:
        px = pool(x)
        y = px
        for _ in range(2):
            y = conv3(bnrelu(pad(y, 1, 1)), wc, bc)
        x = y + px
    x = x[:, 0, :]
    return jnp.dot(x, wcls, precision=HI) + bcls


# ------------------------------------ main -----------------------------------

if __name__ == "__main__":
    # batch, seq, emb_dim, filters, classes, vocab (filters kept lane-aligned at 128)
    B, L, E, F_, C, V = 8, 16, 32, 128, 4, 100
    key = jax.random.PRNGKey(0)
    ks = jax.random.split(key, 10)

    tok = jax.random.randint(ks[0], (B, L), 0, V)
    table = 0.1 * jax.random.normal(ks[1], (V, E), jnp.float32)
    table = table.at[0].set(0.0)                # padding_idx=0
    emb = table[tok]                            # [B, L, E]  (embedding gather = glue)

    # conv weights stored in kernel-friendly [k, Cin, Cout] layout
    wr = 0.1 * jax.random.normal(ks[2], (KS, E, F_), jnp.float32)
    br = 0.1 * jax.random.normal(ks[3], (1, F_), jnp.float32)
    wc = 0.1 * jax.random.normal(ks[4], (KS, F_, F_), jnp.float32)
    bc = 0.1 * jax.random.normal(ks[5], (1, F_), jnp.float32)

    # BatchNorm2d(F) eval-mode, folded to scale/shift
    gamma = 1.0 + 0.1 * jax.random.normal(ks[6], (1, F_), jnp.float32)
    beta = 0.1 * jax.random.normal(ks[7], (1, F_), jnp.float32)
    run_mean = jnp.zeros((1, F_), jnp.float32)
    run_var = jnp.ones((1, F_), jnp.float32)
    bn_s = gamma / jnp.sqrt(run_var + 1e-5)
    bn_b = beta - run_mean * bn_s

    wcls = 0.1 * jax.random.normal(ks[8], (F_, C), jnp.float32)
    bcls = 0.1 * jax.random.normal(ks[9], (1, C), jnp.float32)

    # default tb picker chooses tb=4 -> G=2 grid steps (keeps both v7x cores busy)
    out = dpcnn_forward(emb, wr, br, wc, bc, bn_s, bn_b, wcls, bcls)
    out = jax.block_until_ready(out)
    ref = dpcnn_ref(emb, wr, br, wc, bc, bn_s, bn_b, wcls, bcls)

    assert out.shape == (B, C), out.shape
    # tolerance accounts for bf16 MXU inputs (f32 accumulation) across the pyramid
    err = float(jnp.max(jnp.abs(out - ref)))
    assert jnp.allclose(out, ref, atol=5e-2, rtol=5e-2), (err, out, ref)
    print("KERNEL_OK")
</pallas_src>

<mosaic_0001>
module attributes {stable_mosaic.version = 11 : i64} {
  func.func @kernel(%arg0: i32, %arg1: memref<64x32xbf16, #tpu.memory_space<vmem>>, %arg2: memref<32x384xbf16, #tpu.memory_space<vmem>>, %arg3: memref<1x128xf32, #tpu.memory_space<vmem>>, %arg4: memref<128x384xbf16, #tpu.memory_space<vmem>>, %arg5: memref<1x128xf32, #tpu.memory_space<vmem>>, %arg6: memref<1x128xf32, #tpu.memory_space<vmem>>, %arg7: memref<1x128xf32, #tpu.memory_space<vmem>>, %arg8: memref<1x128xf32, #tpu.memory_space<vmem>>, %arg9: memref<1x128xf32, #tpu.memory_space<vmem>>, %arg10: memref<128x128xf32, #tpu.memory_space<vmem>>, %arg11: memref<1x128xf32, #tpu.memory_space<vmem>>, %arg12: memref<1x8x128xf32, #tpu.memory_space<vmem>>, %arg13: memref<64x128xf32, #tpu.memory_space<vmem>>) attributes {dimension_semantics = [#tpu.dimension_semantics<parallel>], iteration_bounds = array<i64: 2>, scalar_prefetch = 0 : i64, scratch_operands = 1 : i64, tpu.core_type = #tpu.core_type<tc>, window_params = [{transform_indices = @transform_0, window_bounds = array<i64: 64, 32>}, {pipeline_mode = #tpu.pipeline_mode<synchronous>, transform_indices = @transform_1, window_bounds = array<i64: 32, 384>}, {pipeline_mode = #tpu.pipeline_mode<synchronous>, transform_indices = @transform_2, window_bounds = array<i64: 1, 128>}, {pipeline_mode = #tpu.pipeline_mode<synchronous>, transform_indices = @transform_3, window_bounds = array<i64: 128, 384>}, {pipeline_mode = #tpu.pipeline_mode<synchronous>, transform_indices = @transform_4, window_bounds = array<i64: 1, 128>}, {pipeline_mode = #tpu.pipeline_mode<synchronous>, transform_indices = @transform_5, window_bounds = array<i64: 1, 128>}, {pipeline_mode = #tpu.pipeline_mode<synchronous>, transform_indices = @transform_6, window_bounds = array<i64: 1, 128>}, {pipeline_mode = #tpu.pipeline_mode<synchronous>, transform_indices = @transform_7, window_bounds = array<i64: 1, 128>}, {pipeline_mode = #tpu.pipeline_mode<synchronous>, transform_indices = @transform_8, window_bounds = array<i64: 1, 128>}, {pipeline_mode = #tpu.pipeline_mode<synchronous>, transform_indices = @transform_9, window_bounds = array<i64: 128, 128>}, {pipeline_mode = #tpu.pipeline_mode<synchronous>, transform_indices = @transform_10, window_bounds = array<i64: 1, 128>}, {transform_indices = @transform_11, window_bounds = array<i64: 1, 8, 128>}]} {
    %c0 = arith.constant 0 : index
    %c0_0 = arith.constant 0 : index
    %0 = vector.load %arg4[%c0, %c0_0] : memref<128x384xbf16, #tpu.memory_space<vmem>>, vector<128x384xbf16>
    %c0_1 = arith.constant 0 : index
    %c0_2 = arith.constant 0 : index
    %1 = vector.load %arg3[%c0_1, %c0_2] : memref<1x128xf32, #tpu.memory_space<vmem>>, vector<1x128xf32>
    %c0_3 = arith.constant 0 : index
    %c0_4 = arith.constant 0 : index
    %2 = vector.load %arg5[%c0_3, %c0_4] : memref<1x128xf32, #tpu.memory_space<vmem>>, vector<1x128xf32>
    %c0_5 = arith.constant 0 : index
    %c0_6 = arith.constant 0 : index
    %3 = vector.load %arg6[%c0_5, %c0_6] : memref<1x128xf32, #tpu.memory_space<vmem>>, vector<1x128xf32>
    %c0_7 = arith.constant 0 : index
    %c0_8 = arith.constant 0 : index
    %4 = vector.load %arg7[%c0_7, %c0_8] : memref<1x128xf32, #tpu.memory_space<vmem>>, vector<1x128xf32>
    %c0_9 = arith.constant 0 : index
    %c0_10 = arith.constant 0 : index
    %5 = vector.load %arg8[%c0_9, %c0_10] : memref<1x128xf32, #tpu.memory_space<vmem>>, vector<1x128xf32>
    %c0_11 = arith.constant 0 : index
    %c0_12 = arith.constant 0 : index
    %6 = vector.load %arg9[%c0_11, %c0_12] : memref<1x128xf32, #tpu.memory_space<vmem>>, vector<1x128xf32>
    %c0_13 = arith.constant 0 : index
    %c0_14 = arith.constant 0 : index
    %7 = vector.load %arg1[%c0_13, %c0_14] : memref<64x32xbf16, #tpu.memory_space<vmem>>, vector<64x32xbf16>
    %c0_15 = arith.constant 0 : index
    %c0_16 = arith.constant 0 : index
    %8 = vector.load %arg2[%c0_15, %c0_16] : memref<32x384xbf16, #tpu.memory_space<vmem>>, vector<32x384xbf16>
    %cst = arith.constant dense<0.000000e+00> : vector<64x384xf32>
    %9 = tpu.matmul %7, %8, %cst {dimension_numbers = #tpu.dot_dimension_numbers<[1], [0], [0], [1], [0, 0, 1, 1], [], []>} : vector<64x32xbf16>, vector<32x384xbf16>, vector<64x384xf32> -> vector<64x384xf32>
    %10 = vector.extract_strided_slice %9 {offsets = [0, 0], sizes = [64, 128], strides = [1, 1]} : vector<64x384xf32> to vector<64x128xf32>
    %11 = vector.extract_strided_slice %9 {offsets = [0, 128], sizes = [64, 128], strides = [1, 1]} : vector<64x384xf32> to vector<64x128xf32>
    %c63_i32 = arith.constant 63 : i32
    %12 = tpu.dynamic_rotate %11 by %c63_i32 dim 0 : vector<64x128xf32>, i32 -> vector<64x128xf32>
    %13 = arith.addf %10, %12 : vector<64x128xf32>
    %14 = vector.extract_strided_slice %9 {offsets = [0, 256], sizes = [64, 128], strides = [1, 1]} : vector<64x384xf32> to vector<64x128xf32>
    %c62_i32 = arith.constant 62 : i32
    %15 = tpu.dynamic_rotate %14 by %c62_i32 dim 0 : vector<64x128xf32>, i32 -> vector<64x128xf32>
    %16 = arith.addf %13, %15 : vector<64x128xf32>
    %17 = vector.broadcast %1 : vector<1x128xf32> to vector<64x128xf32>
    %18 = arith.addf %16, %17 : vector<64x128xf32>
    %19 = tpu.iota {dimensions = array<i32: 0>} : vector<64x128xi32>
    %c15_i32 = arith.constant 15 : i32
    %20 = vector.broadcast %c15_i32 : i32 to vector<64x128xi32>
    %21 = arith.andi %19, %20 : vector<64x128xi32>
    %c0_i32 = arith.constant 0 : i32
    %22 = vector.broadcast %c0_i32 : i32 to vector<64x128xi32>
    %23 = arith.cmpi eq, %21, %22 : vector<64x128xi32>
    %c13_i32 = arith.constant 13 : i32
    %24 = vector.broadcast %c13_i32 : i32 to vector<64x128xi32>
    %25 = arith.cmpi eq, %21, %24 : vector<64x128xi32>
    %26 = vector.broadcast %3 : vector<1x128xf32> to vector<64x128xf32>
    %27 = arith.mulf %18, %26 : vector<64x128xf32>
    %28 = vector.broadcast %4 : vector<1x128xf32> to vector<64x128xf32>
    %29 = arith.addf %27, %28 : vector<64x128xf32>
    %cst_17 = arith.constant 0.000000e+00 : f32
    %30 = vector.broadcast %cst_17 : f32 to vector<64x128xf32>
    %31 = arith.maximumf %29, %30 : vector<64x128xf32>
    %32 = arith.truncf %31 : vector<64x128xf32> to vector<64x128xbf16>
    %cst_18 = arith.constant dense<0.000000e+00> : vector<64x384xf32>
    %33 = tpu.matmul %32, %0, %cst_18 {dimension_numbers = #tpu.dot_dimension_numbers<[1], [0], [0], [1], [0, 0, 1, 1], [], []>} : vector<64x128xbf16>, vector<128x384xbf16>, vector<64x384xf32> -> vector<64x384xf32>
    %34 = vector.extract_strided_slice %33 {offsets = [0, 0], sizes = [64, 128], strides = [1, 1]} : vector<64x384xf32> to vector<64x128xf32>
    %35 = vector.extract_strided_slice %33 {offsets = [0, 128], sizes = [64, 128], strides = [1, 1]} : vector<64x384xf32> to vector<64x128xf32>
    %36 = vector.extract_strided_slice %33 {offsets = [0, 256], sizes = [64, 128], strides = [1, 1]} : vector<64x384xf32> to vector<64x128xf32>
    %c1_i32 = arith.constant 1 : i32
    %37 = tpu.dynamic_rotate %34 by %c1_i32 dim 0 : vector<64x128xf32>, i32 -> vector<64x128xf32>
    %38 = vector.shape_cast %5 : vector<1x128xf32> to vector<1x128xf32>
    %39 = vector.broadcast %38 : vector<1x128xf32> to vector<64x128xf32>
    %40 = arith.select %23, %39, %37 : vector<64x128xi1>, vector<64x128xf32>
    %c63_i32_19 = arith.constant 63 : i32
    %41 = tpu.dynamic_rotate %36 by %c63_i32_19 dim 0 : vector<64x128xf32>, i32 -> vector<64x128xf32>
    %42 = vector.shape_cast %6 : vector<1x128xf32> to vector<1x128xf32>
    %43 = vector.broadcast %42 : vector<1x128xf32> to vector<64x128xf32>
    %44 = arith.select %25, %43, %41 : vector<64x128xi1>, vector<64x128xf32>
    %45 = arith.addf %35, %40 : vector<64x128xf32>
    %46 = arith.addf %45, %44 : vector<64x128xf32>
    %47 = vector.broadcast %2 : vector<1x128xf32> to vector<64x128xf32>
    %48 = arith.addf %46, %47 : vector<64x128xf32>
    %49 = vector.broadcast %3 : vector<1x128xf32> to vector<64x128xf32>
    %50 = arith.mulf %48, %49 : vector<64x128xf32>
    %51 = vector.broadcast %4 : vector<1x128xf32> to vector<64x128xf32>
    %52 = arith.addf %50, %51 : vector<64x128xf32>
    %cst_20 = arith.constant 0.000000e+00 : f32
    %53 = vector.broadcast %cst_20 : f32 to vector<64x128xf32>
    %54 = arith.maximumf %52, %53 : vector<64x128xf32>
    %55 = arith.truncf %54 : vector<64x128xf32> to vector<64x128xbf16>
    %cst_21 = arith.constant dense<0.000000e+00> : vector<64x384xf32>
    %56 = tpu.matmul %55, %0, %cst_21 {dimension_numbers = #tpu.dot_dimension_numbers<[1], [0], [0], [1], [0, 0, 1, 1], [], []>} : vector<64x128xbf16>, vector<128x384xbf16>, vector<64x384xf32> -> vector<64x384xf32>
    %57 = vector.extract_strided_slice %56 {offsets = [0, 0], sizes = [64, 128], strides = [1, 1]} : vector<64x384xf32> to vector<64x128xf32>
    %58 = vector.extract_strided_slice %56 {offsets = [0, 128], sizes = [64, 128], strides = [1, 1]} : vector<64x384xf32> to vector<64x128xf32>
    %59 = vector.extract_strided_slice %56 {offsets = [0, 256], sizes = [64, 128], strides = [1, 1]} : vector<64x384xf32> to vector<64x128xf32>
    %c1_i32_22 = arith.constant 1 : i32
    %60 = tpu.dynamic_rotate %57 by %c1_i32_22 dim 0 : vector<64x128xf32>, i32 -> vector<64x128xf32>
    %61 = vector.shape_cast %5 : vector<1x128xf32> to vector<1x128xf32>
    %62 = vector.broadcast %61 : vector<1x128xf32> to vector<64x128xf32>
    %63 = arith.select %23, %62, %60 : vector<64x128xi1>, vector<64x128xf32>
    %c63_i32_23 = arith.constant 63 : i32
    %64 = tpu.dynamic_rotate %59 by %c63_i32_23 dim 0 : vector<64x128xf32>, i32 -> vector<64x128xf32>
    %65 = vector.shape_cast %6 : vector<1x128xf32> to vector<1x128xf32>
    %66 = vector.broadcast %65 : vector<1x128xf32> to vector<64x128xf32>
    %67 = arith.select %25, %66, %64 : vector<64x128xi1>, vector<64x128xf32>
    %68 = arith.addf %58, %63 : vector<64x128xf32>
    %69 = arith.addf %68, %67 : vector<64x128xf32>
    %70 = vector.broadcast %2 : vector<1x128xf32> to vector<64x128xf32>
    %71 = arith.addf %69, %70 : vector<64x128xf32>
    %c12_i32 = arith.constant 12 : i32
    %72 = vector.broadcast %c12_i32 : i32 to vector<64x128xi32>
    %73 = arith.cmpi eq, %21, %72 : vector<64x128xi32>
    %c63_i32_24 = arith.constant 63 : i32
    %74 = tpu.dynamic_rotate %71 by %c63_i32_24 dim 0 : vector<64x128xf32>, i32 -> vector<64x128xf32>
    %c62_i32_25 = arith.constant 62 : i32
    %75 = tpu.dynamic_rotate %71 by %c62_i32_25 dim 0 : vector<64x128xf32>, i32 -> vector<64x128xf32>
    %cst_26 = arith.constant 0.000000e+00 : f32
    %76 = vector.broadcast %cst_26 : f32 to vector<64x128xf32>
    %77 = arith.select %73, %76, %75 : vector<64x128xi1>, vector<64x128xf32>
    %78 = arith.maximumf %71, %74 : vector<64x128xf32>
    %79 = arith.maximumf %78, %77 : vector<64x128xf32>
    %c0_27 = arith.constant 0 : index
    %c0_28 = arith.constant 0 : index
    %80 = vector.load %arg13[%c0_27, %c0_28] : memref<64x128xf32, #tpu.memory_space<vmem>>, vector<64x128xf32>
    tpu.vector_store %arg13[%c0_27, %c0_28], %79 {strides = array<i32>} : memref<64x128xf32, #tpu.memory_space<vmem>>, vector<64x128xf32>,
    %c0_29 = arith.constant 0 : index
    %c0_30 = arith.constant 0 : index
    %81 = tpu.strided_load %arg13[%c0_29, %c0_30] {strides = array<i32: 2, 1>} : memref<64x128xf32, #tpu.memory_space<vmem>>, vector<32x128xf32>
    %82 = tpu.iota {dimensions = array<i32: 0>} : vector<32x128xi32>
    %c7_i32 = arith.constant 7 : i32
    %83 = vector.broadcast %c7_i32 : i32 to vector<32x128xi32>
    %84 = arith.andi %82, %83 : vector<32x128xi32>
    %c0_i32_31 = arith.constant 0 : i32
    %85 = vector.broadcast %c0_i32_31 : i32 to vector<32x128xi32>
    %86 = arith.cmpi eq, %84, %85 : vector<32x128xi32>
    %c6_i32 = arith.constant 6 : i32
    %87 = vector.broadcast %c6_i32 : i32 to vector<32x128xi32>
    %88 = arith.cmpi eq, %84, %87 : vector<32x128xi32>
    %89 = vector.broadcast %3 : vector<1x128xf32> to vector<32x128xf32>
    %90 = arith.mulf %81, %89 : vector<32x128xf32>
    %91 = vector.broadcast %4 : vector<1x128xf32> to vector<32x128xf32>
    %92 = arith.addf %90, %91 : vector<32x128xf32>
    %cst_32 = arith.constant 0.000000e+00 : f32
    %93 = vector.broadcast %cst_32 : f32 to vector<32x128xf32>
    %94 = arith.maximumf %92, %93 : vector<32x128xf32>
    %95 = arith.truncf %94 : vector<32x128xf32> to vector<32x128xbf16>
    %cst_33 = arith.constant dense<0.000000e+00> : vector<32x384xf32>
    %96 = tpu.matmul %95, %0, %cst_33 {dimension_numbers = #tpu.dot_dimension_numbers<[1], [0], [0], [1], [0, 0, 1, 1], [], []>} : vector<32x128xbf16>, vector<128x384xbf16>, vector<32x384xf32> -> vector<32x384xf32>
    %97 = vector.extract_strided_slice %96 {offsets = [0, 0], sizes = [32, 128], strides = [1, 1]} : vector<32x384xf32> to vector<32x128xf32>
    %98 = vector.extract_strided_slice %96 {offsets = [0, 128], sizes = [32, 128], strides = [1, 1]} : vector<32x384xf32> to vector<32x128xf32>
    %99 = vector.extract_strided_slice %96 {offsets = [0, 256], sizes = [32, 128], strides = [1, 1]} : vector<32x384xf32> to vector<32x128xf32>
    %c1_i32_34 = arith.constant 1 : i32
    %100 = tpu.dynamic_rotate %97 by %c1_i32_34 dim 0 : vector<32x128xf32>, i32 -> vector<32x128xf32>
    %101 = vector.shape_cast %5 : vector<1x128xf32> to vector<1x128xf32>
    %102 = vector.broadcast %101 : vector<1x128xf32> to vector<32x128xf32>
    %103 = arith.select %86, %102, %100 : vector<32x128xi1>, vector<32x128xf32>
    %c31_i32 = arith.constant 31 : i32
    %104 = tpu.dynamic_rotate %99 by %c31_i32 dim 0 : vector<32x128xf32>, i32 -> vector<32x128xf32>
    %105 = vector.shape_cast %6 : vector<1x128xf32> to vector<1x128xf32>
    %106 = vector.broadcast %105 : vector<1x128xf32> to vector<32x128xf32>
    %107 = arith.select %88, %106, %104 : vector<32x128xi1>, vector<32x128xf32>
    %108 = arith.addf %98, %103 : vector<32x128xf32>
    %109 = arith.addf %108, %107 : vector<32x128xf32>
    %110 = vector.broadcast %2 : vector<1x128xf32> to vector<32x128xf32>
    %111 = arith.addf %109, %110 : vector<32x128xf32>
    %112 = vector.broadcast %3 : vector<1x128xf32> to vector<32x128xf32>
    %113 = arith.mulf %111, %112 : vector<32x128xf32>
    %114 = vector.broadcast %4 : vector<1x128xf32> to vector<32x128xf32>
    %115 = arith.addf %113, %114 : vector<32x128xf32>
    %cst_35 = arith.constant 0.000000e+00 : f32
    %116 = vector.broadcast %cst_35 : f32 to vector<32x128xf32>
    %117 = arith.maximumf %115, %116 : vector<32x128xf32>
    %118 = arith.truncf %117 : vector<32x128xf32> to vector<32x128xbf16>
    %cst_36 = arith.constant dense<0.000000e+00> : vector<32x384xf32>
    %119 = tpu.matmul %118, %0, %cst_36 {dimension_numbers = #tpu.dot_dimension_numbers<[1], [0], [0], [1], [0, 0, 1, 1], [], []>} : vector<32x128xbf16>, vector<128x384xbf16>, vector<32x384xf32> -> vector<32x384xf32>
    %120 = vector.extract_strided_slice %119 {offsets = [0, 0], sizes = [32, 128], strides = [1, 1]} : vector<32x384xf32> to vector<32x128xf32>
    %121 = vector.extract_strided_slice %119 {offsets = [0, 128], sizes = [32, 128], strides = [1, 1]} : vector<32x384xf32> to vector<32x128xf32>
    %122 = vector.extract_strided_slice %119 {offsets = [0, 256], sizes = [32, 128], strides = [1, 1]} : vector<32x384xf32> to vector<32x128xf32>
    %c1_i32_37 = arith.constant 1 : i32
    %123 = tpu.dynamic_rotate %120 by %c1_i32_37 dim 0 : vector<32x128xf32>, i32 -> vector<32x128xf32>
    %124 = vector.shape_cast %5 : vector<1x128xf32> to vector<1x128xf32>
    %125 = vector.broadcast %124 : vector<1x128xf32> to vector<32x128xf32>
    %126 = arith.select %86, %125, %123 : vector<32x128xi1>, vector<32x128xf32>
    %c31_i32_38 = arith.constant 31 : i32
    %127 = tpu.dynamic_rotate %122 by %c31_i32_38 dim 0 : vector<32x128xf32>, i32 -> vector<32x128xf32>
    %128 = vector.shape_cast %6 : vector<1x128xf32> to vector<1x128xf32>
    %129 = vector.broadcast %128 : vector<1x128xf32> to vector<32x128xf32>
    %130 = arith.select %88, %129, %127 : vector<32x128xi1>, vector<32x128xf32>
    %131 = arith.addf %121, %126 : vector<32x128xf32>
    %132 = arith.addf %131, %130 : vector<32x128xf32>
    %133 = vector.broadcast %2 : vector<1x128xf32> to vector<32x128xf32>
    %134 = arith.addf %132, %133 : vector<32x128xf32>
    %135 = arith.addf %134, %81 : vector<32x128xf32>
    %c5_i32 = arith.constant 5 : i32
    %136 = vector.broadcast %c5_i32 : i32 to vector<32x128xi32>
    %137 = arith.cmpi eq, %84, %136 : vector<32x128xi32>
    %c31_i32_39 = arith.constant 31 : i32
    %138 = tpu.dynamic_rotate %135 by %c31_i32_39 dim 0 : vector<32x128xf32>, i32 -> vector<32x128xf32>
    %c30_i32 = arith.constant 30 : i32
    %139 = tpu.dynamic_rotate %135 by %c30_i32 dim 0 : vector<32x128xf32>, i32 -> vector<32x128xf32>
    %cst_40 = arith.constant 0.000000e+00 : f32
    %140 = vector.broadcast %cst_40 : f32 to vector<32x128xf32>
    %141 = arith.select %137, %140, %139 : vector<32x128xi1>, vector<32x128xf32>
    %142 = arith.maximumf %135, %138 : vector<32x128xf32>
    %143 = arith.maximumf %142, %141 : vector<32x128xf32>
    %c0_41 = arith.constant 0 : index
    %c0_42 = arith.constant 0 : index
    %144 = vector.load %arg13[%c0_41, %c0_42] : memref<64x128xf32, #tpu.memory_space<vmem>>, vector<32x128xf32>
    tpu.vector_store %arg13[%c0_41, %c0_42], %143 {strides = array<i32>} : memref<64x128xf32, #tpu.memory_space<vmem>>, vector<32x128xf32>,
    %c0_43 = arith.constant 0 : index
    %c0_44 = arith.constant 0 : index
    %145 = tpu.strided_load %arg13[%c0_43, %c0_44] {strides = array<i32: 2, 1>} : memref<64x128xf32, #tpu.memory_space<vmem>>, vector<16x128xf32>
    %146 = tpu.iota {dimensions = array<i32: 0>} : vector<16x128xi32>
    %c3_i32 = arith.constant 3 : i32
    %147 = vector.broadcast %c3_i32 : i32 to vector<16x128xi32>
    %148 = arith.andi %146, %147 : vector<16x128xi32>
    %c0_i32_45 = arith.constant 0 : i32
    %149 = vector.broadcast %c0_i32_45 : i32 to vector<16x128xi32>
    %150 = arith.cmpi eq, %148, %149 : vector<16x128xi32>
    %c2_i32 = arith.constant 2 : i32
    %151 = vector.broadcast %c2_i32 : i32 to vector<16x128xi32>
    %152 = arith.cmpi eq, %148, %151 : vector<16x128xi32>
    %153 = vector.broadcast %3 : vector<1x128xf32> to vector<16x128xf32>
    %154 = arith.mulf %145, %153 : vector<16x128xf32>
    %155 = vector.broadcast %4 : vector<1x128xf32> to vector<16x128xf32>
    %156 = arith.addf %154, %155 : vector<16x128xf32>
    %cst_46 = arith.constant 0.000000e+00 : f32
    %157 = vector.broadcast %cst_46 : f32 to vector<16x128xf32>
    %158 = arith.maximumf %156, %157 : vector<16x128xf32>
    %159 = arith.truncf %158 : vector<16x128xf32> to vector<16x128xbf16>
    %cst_47 = arith.constant dense<0.000000e+00> : vector<16x384xf32>
    %160 = tpu.matmul %159, %0, %cst_47 {dimension_numbers = #tpu.dot_dimension_numbers<[1], [0], [0], [1], [0, 0, 1, 1], [], []>} : vector<16x128xbf16>, vector<128x384xbf16>, vector<16x384xf32> -> vector<16x384xf32>
    %161 = vector.extract_strided_slice %160 {offsets = [0, 0], sizes = [16, 128], strides = [1, 1]} : vector<16x384xf32> to vector<16x128xf32>
    %162 = vector.extract_strided_slice %160 {offsets = [0, 128], sizes = [16, 128], strides = [1, 1]} : vector<16x384xf32> to vector<16x128xf32>
    %163 = vector.extract_strided_slice %160 {offsets = [0, 256], sizes = [16, 128], strides = [1, 1]} : vector<16x384xf32> to vector<16x128xf32>
    %c1_i32_48 = arith.constant 1 : i32
    %164 = tpu.dynamic_rotate %161 by %c1_i32_48 dim 0 : vector<16x128xf32>, i32 -> vector<16x128xf32>
    %165 = vector.shape_cast %5 : vector<1x128xf32> to vector<1x128xf32>
    %166 = vector.broadcast %165 : vector<1x128xf32> to vector<16x128xf32>
    %167 = arith.select %150, %166, %164 : vector<16x128xi1>, vector<16x128xf32>
    %c15_i32_49 = arith.constant 15 : i32
    %168 = tpu.dynamic_rotate %163 by %c15_i32_49 dim 0 : vector<16x128xf32>, i32 -> vector<16x128xf32>
    %169 = vector.shape_cast %6 : vector<1x128xf32> to vector<1x128xf32>
    %170 = vector.broadcast %169 : vector<1x128xf32> to vector<16x128xf32>
    %171 = arith.select %152, %170, %168 : vector<16x128xi1>, vector<16x128xf32>
    %172 = arith.addf %162, %167 : vector<16x128xf32>
    %173 = arith.addf %172, %171 : vector<16x128xf32>
    %174 = vector.broadcast %2 : vector<1x128xf32> to vector<16x128xf32>
    %175 = arith.addf %173, %174 : vector<16x128xf32>
    %176 = vector.broadcast %3 : vector<1x128xf32> to vector<16x128xf32>
    %177 = arith.mulf %175, %176 : vector<16x128xf32>
    %178 = vector.broadcast %4 : vector<1x128xf32> to vector<16x128xf32>
    %179 = arith.addf %177, %178 : vector<16x128xf32>
    %cst_50 = arith.constant 0.000000e+00 : f32
    %180 = vector.broadcast %cst_50 : f32 to vector<16x128xf32>
    %181 = arith.maximumf %179, %180 : vector<16x128xf32>
    %182 = arith.truncf %181 : vector<16x128xf32> to vector<16x128xbf16>
    %cst_51 = arith.constant dense<0.000000e+00> : vector<16x384xf32>
    %183 = tpu.matmul %182, %0, %cst_51 {dimension_numbers = #tpu.dot_dimension_numbers<[1], [0], [0], [1], [0, 0, 1, 1], [], []>} : vector<16x128xbf16>, vector<128x384xbf16>, vector<16x384xf32> -> vector<16x384xf32>
    %184 = vector.extract_strided_slice %183 {offsets = [0, 0], sizes = [16, 128], strides = [1, 1]} : vector<16x384xf32> to vector<16x128xf32>
    %185 = vector.extract_strided_slice %183 {offsets = [0, 128], sizes = [16, 128], strides = [1, 1]} : vector<16x384xf32> to vector<16x128xf32>
    %186 = vector.extract_strided_slice %183 {offsets = [0, 256], sizes = [16, 128], strides = [1, 1]} : vector<16x384xf32> to vector<16x128xf32>
    %c1_i32_52 = arith.constant 1 : i32
    %187 = tpu.dynamic_rotate %184 by %c1_i32_52 dim 0 : vector<16x128xf32>, i32 -> vector<16x128xf32>
    %188 = vector.shape_cast %5 : vector<1x128xf32> to vector<1x128xf32>
    %189 = vector.broadcast %188 : vector<1x128xf32> to vector<16x128xf32>
    %190 = arith.select %150, %189, %187 : vector<16x128xi1>, vector<16x128xf32>
    %c15_i32_53 = arith.constant 15 : i32
    %191 = tpu.dynamic_rotate %186 by %c15_i32_53 dim 0 : vector<16x128xf32>, i32 -> vector<16x128xf32>
    %192 = vector.shape_cast %6 : vector<1x128xf32> to vector<1x128xf32>
    %193 = vector.broadcast %192 : vector<1x128xf32> to vector<16x128xf32>
    %194 = arith.select %152, %193, %191 : vector<16x128xi1>, vector<16x128xf32>
    %195 = arith.addf %185, %190 : vector<16x128xf32>
    %196 = arith.addf %195, %194 : vector<16x128xf32>
    %197 = vector.broadcast %2 : vector<1x128xf32> to vector<16x128xf32>
    %198 = arith.addf %196, %197 : vector<16x128xf32>
    %199 = arith.addf %198, %145 : vector<16x128xf32>
    %c1_i32_54 = arith.constant 1 : i32
    %200 = vector.broadcast %c1_i32_54 : i32 to vector<16x128xi32>
    %201 = arith.cmpi eq, %148, %200 : vector<16x128xi32>
    %c15_i32_55 = arith.constant 15 : i32
    %202 = tpu.dynamic_rotate %199 by %c15_i32_55 dim 0 : vector<16x128xf32>, i32 -> vector<16x128xf32>
    %c14_i32 = arith.constant 14 : i32
    %203 = tpu.dynamic_rotate %199 by %c14_i32 dim 0 : vector<16x128xf32>, i32 -> vector<16x128xf32>
    %cst_56 = arith.constant 0.000000e+00 : f32
    %204 = vector.broadcast %cst_56 : f32 to vector<16x128xf32>
    %205 = arith.select %201, %204, %203 : vector<16x128xi1>, vector<16x128xf32>
    %206 = arith.maximumf %199, %202 : vector<16x128xf32>
    %207 = arith.maximumf %206, %205 : vector<16x128xf32>
    %c0_57 = arith.constant 0 : index
    %c0_58 = arith.constant 0 : index
    %208 = vector.load %arg13[%c0_57, %c0_58] : memref<64x128xf32, #tpu.memory_space<vmem>>, vector<16x128xf32>
    tpu.vector_store %arg13[%c0_57, %c0_58], %207 {strides = array<i32>} : memref<64x128xf32, #tpu.memory_space<vmem>>, vector<16x128xf32>,
    %c0_59 = arith.constant 0 : index
    %c0_60 = arith.constant 0 : index
    %209 = tpu.strided_load %arg13[%c0_59, %c0_60] {strides = array<i32: 2, 1>} : memref<64x128xf32, #tpu.memory_space<vmem>>, vector<8x128xf32>
    %210 = vector.broadcast %3 : vector<1x128xf32> to vector<8x128xf32>
    %211 = arith.mulf %209, %210 : vector<8x128xf32>
    %212 = vector.broadcast %4 : vector<1x128xf32> to vector<8x128xf32>
    %213 = arith.addf %211, %212 : vector<8x128xf32>
    %cst_61 = arith.constant 0.000000e+00 : f32
    %214 = vector.broadcast %cst_61 : f32 to vector<8x128xf32>
    %215 = arith.maximumf %213, %214 : vector<8x128xf32>
    %216 = arith.truncf %215 : vector<8x128xf32> to vector<8x128xbf16>
    %cst_62 = arith.constant dense<0.000000e+00> : vector<8x384xf32>
    %217 = tpu.matmul %216, %0, %cst_62 {dimension_numbers = #tpu.dot_dimension_numbers<[1], [0], [0], [1], [0, 0, 1, 1], [], []>} : vector<8x128xbf16>, vector<128x384xbf16>, vector<8x384xf32> -> vector<8x384xf32>
    %218 = vector.extract_strided_slice %217 {offsets = [0, 128], sizes = [8, 128], strides = [1, 1]} : vector<8x384xf32> to vector<8x128xf32>
    %219 = vector.broadcast %5 : vector<1x128xf32> to vector<8x128xf32>
    %220 = arith.addf %218, %219 : vector<8x128xf32>
    %221 = vector.broadcast %6 : vector<1x128xf32> to vector<8x128xf32>
    %222 = arith.addf %220, %221 : vector<8x128xf32>
    %223 = vector.broadcast %2 : vector<1x128xf32> to vector<8x128xf32>
    %224 = arith.addf %222, %223 : vector<8x128xf32>
    %225 = vector.broadcast %3 : vector<1x128xf32> to vector<8x128xf32>
    %226 = arith.mulf %224, %225 : vector<8x128xf32>
    %227 = vector.broadcast %4 : vector<1x128xf32> to vector<8x128xf32>
    %228 = arith.addf %226, %227 : vector<8x128xf32>
    %cst_63 = arith.constant 0.000000e+00 : f32
    %229 = vector.broadcast %cst_63 : f32 to vector<8x128xf32>
    %230 = arith.maximumf %228, %229 : vector<8x128xf32>
    %231 = arith.truncf %230 : vector<8x128xf32> to vector<8x128xbf16>
    %cst_64 = arith.constant dense<0.000000e+00> : vector<8x384xf32>
    %232 = tpu.matmul %231, %0, %cst_64 {dimension_numbers = #tpu.dot_dimension_numbers<[1], [0], [0], [1], [0, 0, 1, 1], [], []>} : vector<8x128xbf16>, vector<128x384xbf16>, vector<8x384xf32> -> vector<8x384xf32>
    %233 = vector.extract_strided_slice %232 {offsets = [0, 128], sizes = [8, 128], strides = [1, 1]} : vector<8x384xf32> to vector<8x128xf32>
    %234 = vector.broadcast %5 : vector<1x128xf32> to vector<8x128xf32>
    %235 = arith.addf %233, %234 : vector<8x128xf32>
    %236 = vector.broadcast %6 : vector<1x128xf32> to vector<8x128xf32>
    %237 = arith.addf %235, %236 : vector<8x128xf32>
    %238 = vector.broadcast %2 : vector<1x128xf32> to vector<8x128xf32>
    %239 = arith.addf %237, %238 : vector<8x128xf32>
    %240 = arith.addf %239, %209 : vector<8x128xf32>
    %c0_65 = arith.constant 0 : index
    %c0_66 = arith.constant 0 : index
    %241 = vector.load %arg10[%c0_65, %c0_66] : memref<128x128xf32, #tpu.memory_space<vmem>>, vector<128x128xf32>
    %cst_67 = arith.constant dense<0.000000e+00> : vector<8x128xf32>
    %242 = tpu.matmul %240, %241, %cst_67 {dimension_numbers = #tpu.dot_dimension_numbers<[1], [0], [0], [1], [0, 0, 1, 1], [], []>} : vector<8x128xf32>, vector<128x128xf32>, vector<8x128xf32> -> vector<8x128xf32>
    %c0_68 = arith.constant 0 : index
    %c0_69 = arith.constant 0 : index
    %243 = vector.load %arg11[%c0_68, %c0_69] : memref<1x128xf32, #tpu.memory_space<vmem>>, vector<1x128xf32>
    %244 = vector.broadcast %243 : vector<1x128xf32> to vector<8x128xf32>
    %245 = arith.addf %242, %244 : vector<8x128xf32>
    %c0_70 = arith.constant 0 : index
    %c0_71 = arith.constant 0 : index
    %c0_72 = arith.constant 0 : index
    %246 = vector.load %arg12[%c0_70, %c0_71, %c0_72] : memref<1x8x128xf32, #tpu.memory_space<vmem>>, vector<1x8x128xf32>
    %247 = vector.shape_cast %246 : vector<1x8x128xf32> to vector<8x128xf32>
    %248 = vector.shape_cast %245 : vector<8x128xf32> to vector<1x8x128xf32>
    tpu.vector_store %arg12[%c0_70, %c0_71, %c0_72], %248 {strides = array<i32>} : memref<1x8x128xf32, #tpu.memory_space<vmem>>, vector<1x8x128xf32>,
    return
  }
  func.func @transform_0(%arg0: i32) -> (i32, i32) {
    %c0_i32 = arith.constant 0 : i32
    %c0_i32_0 = arith.constant 0 : i32
    return %arg0, %c0_i32 : i32, i32
  }
  func.func @transform_1(%arg0: i32) -> (i32, i32) {
    %c0_i32 = arith.constant 0 : i32
    %c0_i32_0 = arith.constant 0 : i32
    %c0_i32_1 = arith.constant 0 : i32
    return %c0_i32, %c0_i32_0 : i32, i32
  }
  func.func @transform_2(%arg0: i32) -> (i32, i32) {
    %c0_i32 = arith.constant 0 : i32
    %c0_i32_0 = arith.constant 0 : i32
    %c0_i32_1 = arith.constant 0 : i32
    return %c0_i32, %c0_i32_0 : i32, i32
  }
  func.func @transform_3(%arg0: i32) -> (i32, i32) {
    %c0_i32 = arith.constant 0 : i32
    %c0_i32_0 = arith.constant 0 : i32
    %c0_i32_1 = arith.constant 0 : i32
    return %c0_i32, %c0_i32_0 : i32, i32
  }
  func.func @transform_4(%arg0: i32) -> (i32, i32) {
    %c0_i32 = arith.constant 0 : i32
    %c0_i32_0 = arith.constant 0 : i32
    %c0_i32_1 = arith.constant 0 : i32
    return %c0_i32, %c0_i32_0 : i32, i32
  }
  func.func @transform_5(%arg0: i32) -> (i32, i32) {
    %c0_i32 = arith.constant 0 : i32
    %c0_i32_0 = arith.constant 0 : i32
    %c0_i32_1 = arith.constant 0 : i32
    return %c0_i32, %c0_i32_0 : i32, i32
  }
  func.func @transform_6(%arg0: i32) -> (i32, i32) {
    %c0_i32 = arith.constant 0 : i32
    %c0_i32_0 = arith.constant 0 : i32
    %c0_i32_1 = arith.constant 0 : i32
    return %c0_i32, %c0_i32_0 : i32, i32
  }
  func.func @transform_7(%arg0: i32) -> (i32, i32) {
    %c0_i32 = arith.constant 0 : i32
    %c0_i32_0 = arith.constant 0 : i32
    %c0_i32_1 = arith.constant 0 : i32
    return %c0_i32, %c0_i32_0 : i32, i32
  }
  func.func @transform_8(%arg0: i32) -> (i32, i32) {
    %c0_i32 = arith.constant 0 : i32
    %c0_i32_0 = arith.constant 0 : i32
    %c0_i32_1 = arith.constant 0 : i32
    return %c0_i32, %c0_i32_0 : i32, i32
  }
  func.func @transform_9(%arg0: i32) -> (i32, i32) {
    %c0_i32 = arith.constant 0 : i32
    %c0_i32_0 = arith.constant 0 : i32
    %c0_i32_1 = arith.constant 0 : i32
    return %c0_i32, %c0_i32_0 : i32, i32
  }
  func.func @transform_10(%arg0: i32) -> (i32, i32) {
    %c0_i32 = arith.constant 0 : i32
    %c0_i32_0 = arith.constant 0 : i32
    %c0_i32_1 = arith.constant 0 : i32
    return %c0_i32, %c0_i32_0 : i32, i32
  }
  func.func @transform_11(%arg0: i32) -> (i32, i32, i32) {
    %c0_i32 = arith.constant 0 : i32
    %c0_i32_0 = arith.constant 0 : i32
    %c0_i32_1 = arith.constant 0 : i32
    return %arg0, %c0_i32, %c0_i32_0 : i32, i32, i32
  }
}

</mosaic_0001>

<bundles_post_ra>
// kernel: tpu_custom_call.1
= control target key start
LH: loop header
LB: loop body
LE: loop exit
PB: predicated region body
PF: predicated region fallthrough
CT: control target
= control target key end

     0   :  { %16 = vsyncpa [#allocation4], 0  ;;  %s4280_s0 = inlined_call_operand.vmem [shape: bf16[128,32], index: 0, kind: input, shape index: {}]   ;;  %s4281_s1 = inlined_call_operand.vmem [shape: bf16[32,384], index: 1, kind: input, shape index: {}]   ;;  %s4282_s2 = inlined_call_operand.vmem [shape: f32[1,128], index: 2, kind: input, shape index: {}]   ;;  %s4283_s3 = inlined_call_operand.hbm [shape: bf16[128,384], index: 3, kind: input, shape index: {}]   ;;  %s4284_s4 = inlined_call_operand.vmem [shape: f32[1,128], index: 4, kind: input, shape index: {}]   ;;  %s4285_s5 = inlined_call_operand.vmem [shape: f32[1,128], index: 5, kind: input, shape index: {}]   ;;  %s4286_s6 = inlined_call_operand.vmem [shape: f32[1,128], index: 6, kind: input, shape index: {}]   ;;  %s4287_s7 = inlined_call_operand.vmem [shape: f32[1,128], index: 7, kind: input, shape index: {}]   ;;  %s4288_s8 = inlined_call_operand.vmem [shape: f32[1,128], index: 8, kind: input, shape index: {}]   ;;  %s4289_s9 = inlined_call_operand.hbm [shape: f32[128,128], index: 9, kind: input, shape index: {}]   ;;  %s4290_s10 = inlined_call_operand.vmem [shape: f32[1,128], index: 10, kind: input, shape index: {}]   ;;  %s4291_s11 = inlined_call_operand.hbm [shape: f32[2,8,128], index: 11, kind: output, shape index: {}]  }
   0x1   :  { %17 = vsyncpa [#allocation7], 0 }
   0x2   :  { %18 = vsyncpa [#allocation5], 0 }
   0x3   :  { %20 = vsyncpa [#allocation5 + $0x1], 0  ;;  %s3030_s17 = smov 0   ;;  %s3032_s18 = smov 0  }
   0x4   :  { %s3034_s19 = smov 0   ;;  %s3036_s20 = smov 0  }
   0x5 LB: > { %4314 = sst [smem:[#allocation12_spill]] %s2954_s19  ;;  %s3051_s21 = sadd.s32 4294967295, %s2958_s20   ;;  %s2958_s20 = sphi %s3036_s20, %s4379_s20   ;;  %s2954_s19 = sphi %s3034_s19, %s4381_s19   ;;  %s2950_s18 = sphi %s3032_s18, %s4383_s18   ;;  %s2946_s17 = sphi %s3030_s17, %s4382_s17  }
   0x6   : > { %s2374_s22 = sadd.s32 4294967294, %s2958_s20   ;;  %s3055_s23 = sadd.s32 1, %s2958_s20  }
   0x7   : > { %4315 = sst [smem:[#allocation13_spill]] %s3055_s23  ;;  %s269_s24 = sadd.s32 1, %s2954_s19 }
   0x8   : > { %s266_s25 = ssub.s32 %s2958_s20, %s3055_s23  ;;  %p279_p0 = scmp.ne.s32.totalorder %s2954_s19, %s2950_s18 }
   0x9   : > { %p267_p1 = scmp.eq.s32.totalorder %s266_s25, 0  ;;  %p280_p2 = scmp.eq.s32.totalorder %s3051_s21, 1 }
   0xa   : > { %p285_p3 = scmp.ne.s32.totalorder %s2950_s18, %s2946_s17  ;;  %p286_p4 = scmp.eq.s32.totalorder %s2374_s22, 1 }
   0xb   : > { %s3066_s26 = scalar_select %p267_p1, %s2954_s19, %s269_s24  }
   0xc   : > { %p3068_p5 = por %p280_p2, %p279_p0  ;;  %p3072_p6 = por %p286_p4, %p285_p3 }
   0xd   : > { %4316 = sst [smem:[#allocation14_spill]] %s3066_s26  ;;  %p2375_p7 = scmp.ge.s32.totalorder %s2958_s20, 1 }
   0xe   : > { %s4318_s28 = scalar_select %p3072_p6, 1, 0 }
   0xf   : > { %p293_p8 = scmp.lt.s32.totalorder %s2958_s20, 3  ;;  %p4292_p9 = scmp.eq.s32.totalorder %s3051_s21, 0 }
  0x10   : > { %s2960_s30 = smov [#allocation3]   ;;  %s2961_s14 = smov [#allocation6]  }
  0x11   : > { %p3079_p10 = pnand %p2375_p7, %p293_p8  ;;  %s311_s12 = sshll.u32 %s2960_s30, 4  ;;  %s312_s12 = int_to_ptr.vmem [resolvable:$true] %s311_s12 }
  0x12   : > { %s339_s15 = sshll.u32 %s2961_s14, 4  ;;  %s2849_s16 = scalar_lea.vmem %s312_s12, 3072  ;;  %s340_s15 = int_to_ptr.vmem [resolvable:$true] %s339_s15 }
  0x13   : > { %p2708_p11 = pneg %p3079_p10  ;;  %p2850_p0 = scmp.ne.s32.totalorder %s312_s12, %s2849_s16 }
  0x14   : > { %p2857_p3 = scmp.lt.s32.totalorder %s312_s12, %s312_s12  ;;  %p2858_p4 = scmp.lt.s32.totalorder %s2849_s16, %s2849_s16 }
  0x15   : > { %p3087_p12 = pnand %p4292_p9, %p2708_p11 }
  0x16   : > { %p2859_p7 = por %p2858_p4, %p2857_p3 }
  0x17   : > { %p2840_p13 = pneg %p3087_p12 }
  0x19   : > { %p2852_p1 = pnand %p2850_p0, %p2840_p13 }
  0x1b   : > { %p2853_p2 = pneg %p2852_p1 }
  0x1d   : > { %p2860_p8 = pnand %p2859_p7, %p2853_p2 }
  0x1f   : > { %2863 = shalt.err (!%p2860_p8)
}
  0x20   : > { %s2962_s22 = smov 192   ;;  %s2963_s24 = smov 12  }
  0x21   : > { %2711 = dma.hbm_to_vmem [thread:$0]  (!%p3087_p12), %s4283_s3, 3072, %s312_s12, [#allocation4], %s2962_s22, %s2962_s22, %s2963_s24  }
  0x22   : > { %s2875_s14 = scalar_lea.vmem %s340_s15, 2048  ;;  %p2883_p9 = scmp.lt.s32.totalorder %s340_s15, %s340_s15 }
  0x23   : > { %p2876_p11 = scmp.ne.s32.totalorder %s340_s15, %s2875_s14  ;;  %p2884_p6 = scmp.lt.s32.totalorder %s2875_s14, %s2875_s14 }
  0x25   : > { %p2878_p0 = pnand %p2876_p11, %p2840_p13  ;;  %p2885_p3 = por %p2884_p6, %p2883_p9 }
  0x27   : > { %p2879_p1 = pneg %p2878_p0 }
  0x29   : > { %p2886_p2 = pnand %p2885_p3, %p2879_p1 }
  0x2b   : > { %2889 = shalt.err (!%p2886_p2)
}
  0x2c   : > { %s2964_s16 = smov 128   ;;  %s2965_s26 = smov 8  }
  0x2d   : > { %2714 = dma.hbm_to_vmem [thread:$0]  (!%p3087_p12), %s4289_s9, 2048, %s340_s15, [#allocation7], %s2964_s16, %s2964_s16, %s2965_s26  }
  0x2e   : > { %367 = sbr.rel (%p3079_p10) target bundleno = 2310 (0x906), region = 64 }
  0x33   : > { %p4321_p4 = scmp.eq.s32.totalorder %s3051_s21, 0 }
  0x35   : > { %2933 = dma.done.wait (%p4321_p4), [#allocation4], 3072   ;;  %p4322_p13 = pmov %p4321_p4 }
  0x36   : > { %p4323_p6 = pmov %p4321_p4 }
  0x37   : > { %2935 = vsyncadd (%p4322_p13), [#allocation4], 4294964224 }
  0x38   : > { %2937 = dma.done.wait (%p4323_p6), [#allocation7], 2048   ;;  %p4324_p9 = pmov %p4321_p4 }
  0x39   : > { %s2383_s12 = sshll.u32 %s3051_s21, 3  ;;  %v4297_v0 = vmov 0   ;;  %v2765_v1 = vld [vmem:[%s4281_s1 + $0x1c] ss:$12 sps:$4 sm:$0xff]   ;;  %v2767_v2 = vld [vmem:[%s4281_s1 + $0x20] ss:$12 sps:$4 sm:$0xff]   ;;  %v683_v35 = vlaneseq }
  0x3a   : > { %2939 = vsyncadd (%p4324_p9), [#allocation7], 4294965248  ;;  %569 = vmatprep.mubr.bf16.mxu0 %v4297_v0  ;;  %p412_p12 = scmp.lt.s32.totalorder %s2383_s12, 15  ;;  %549 = vmatprep.subr.bf16.mxu0 %v2765_v1  ;;  %v2768_v3 = vld [vmem:[%s4281_s1 + $0x18] ss:$12 sps:$4 sm:$0xff]   ;;  %vm524_vm0 = vcmask 261120  }
  0x3b   : > { %2523 = vmatprep.subr.bf16.mxu1 %v2767_v2  ;;  %v2769_v4 = vld [vmem:[%s4281_s1 + $0x4] ss:$12 sps:$4 sm:$0xff]   ;;  %550 = vmatpush1.bf16.msra.mxu0 %v2768_v3  ;;  %v2771_v5 = vld [vmem:[%s4281_s1 + $0x8] ss:$12 sps:$4 sm:$0xff]   ;;  %v2772_v6 = vld [vmem:[%s4281_s1] ss:$12 sps:$4 sm:$0xff]  }
  0x3c   : > { %s4385_s12 = smov (!%p412_p12, %s2383_s12), 15  ;;  %2524 = vmatpush3.bf16.msra.mxu1 %v2767_v2  ;;  %551 = vmatprep.subr.bf16.mxu0 %v2769_v4  ;;  %v3143_v10 = vld [vmem:[#allocation3 + $0xac] ss:$12 sps:$4 sm:$0xff]   ;;  %v3145_v11 = vld [vmem:[#allocation3 + $0xa8] ss:$12 sps:$4 sm:$0xff]   ;;  %v3240_v40 = vshrl.u32 %v683_v35, 7 }
  0x3d   : > { %s2384_s19 = sshll.u32 %s4385_s12, 2  ;;  %2525 = vmatprep.subr.bf16.mxu1 %v2771_v5  ;;  %4325 = vst [vmem:[#allocation15_spill] sm:$0xff] %v3143_v10  ;;  %v3147_v12 = vld [vmem:[#allocation3 + $0x94] ss:$12 sps:$4 sm:$0xff]   ;;  %v3163_v14 = vld [vmem:[#allocation3 + $0x90] ss:$12 sps:$4 sm:$0xff]  }
  0x3e   : > { %s415_s30 = scalar_lea.vmem %s4280_s0, %s2384_s19  ;;  %v3166_v15 = vld [vmem:[#allocation3 + $0x7c] ss:$12 sps:$4 sm:$0xff]   ;;  %v3170_v17 = vld [vmem:[#allocation3 + $0x78] ss:$12 sps:$4 sm:$0xff]   ;;  %v3180_v20 = vld [vmem:[#allocation3 + $0x60] ss:$12 sps:$4 sm:$0xff]  }
  0x3f   : > { %v2773_v7 = vld [vmem:[%s415_s30] sm:$0xff]   ;;  %v2774_v8 = vld [vmem:[%s415_s30 + $0x8] sm:$0xff]   ;;  %552 = vmatpush1.bf16.msra.mxu0 %v2772_v6  ;;  %v2775_v9 = vld [vmem:[%s415_s30 + $0x10] sm:$0xff]   ;;  %vm685_vm1 = vcmp.lt.s32.totalorder %v3240_v40, 7  ;;  %vm710_vm2 = vcmp.lt.s32.totalorder %v3240_v40, 6  ;;  %vm1086_vm3 = vcmp.lt.s32.totalorder %v3240_v40, 1 }
  0x40   : > { %2527 = vmatprep.mubr.msk.bf16.mxu1 %vm524_vm0, %v2773_v7  ;;  %2526 = vmatpush3.bf16.msra.mxu1 %v2771_v5  ;;  %v2776_v13 = vld [vmem:[%s415_s30 + $0x18] sm:$0xff]   ;;  %v3176_v18 = vld [vmem:[#allocation3 + $0x64] ss:$12 sps:$4 sm:$0xff]   ;;  %v3188_v22 = vld [vmem:[#allocation3 + $0x48] ss:$12 sps:$4 sm:$0xff]   ;;  %s408_s12 = sand.u32 1, %s2950_s18  }
  0x41   : > { %940 = vmatprep.subr.bf16.mxu0 %v3143_v10  ;;  %v3168_v16 = vld [vmem:[#allocation3 + $0xb0] ss:$12 sps:$4 sm:$0xff]   ;;  %v3178_v19 = vld [vmem:[#allocation3 + $0x98] ss:$12 sps:$4 sm:$0xff]   ;;  %v3190_v23 = vld [vmem:[#allocation3 + $0x80] ss:$12 sps:$4 sm:$0xff]  }
  0x42   : > { %2395 = vmatmul.mubr.msk.bf16.vlgmr.msra.gmra.mxu0 %vm524_vm0, %v2773_v7  ;;  %2535 = vmatprep.subr.bf16.mxu1 %v3168_v16  ;;  %v3186_v21 = vld [vmem:[#allocation3 + $0x4c] ss:$12 sps:$4 sm:$0xff]   ;;  %v3196_v24 = vld [vmem:[#allocation3 + $0x34] ss:$12 sps:$4 sm:$0xff]   ;;  %v3200_v26 = vld [vmem:[#allocation3 + $0x30] ss:$12 sps:$4 sm:$0xff]  }
  0x43   : > { %2528 = vmatmul.mubr.msk.bf16.vlgmr.msra.gmra.mxu1 %vm524_vm0, %v2774_v8  ;;  %579 = vmatprep.mubr.bf16.mxu0 %v4297_v0  ;;  %v3198_v25 = vld [vmem:[#allocation3 + $0x68] ss:$12 sps:$4 sm:$0xff]   ;;  %v3208_v28 = vld [vmem:[#allocation3 + $0x50] ss:$12 sps:$4 sm:$0xff]   ;;  %v3210_v29 = vld [vmem:[#allocation3 + $0x18] ss:$12 sps:$4 sm:$0xff]  }
  0x44   : > { %2531 = vmatprep.mubr.msk.bf16.mxu1 %vm524_vm0, %v2775_v9  ;;  %941 = vmatpush1.bf16.msra.mxu0 %v3145_v11  ;;  %v3206_v27 = vld [vmem:[#allocation3 + $0x1c] ss:$12 sps:$4 sm:$0xff]   ;;  %v3216_v30 = vld [vmem:[#allocation3 + $0x4] ss:$12 sps:$4 sm:$0xff]   ;;  %v3220_v32 = vld [vmem:[#allocation3] ss:$12 sps:$4 sm:$0xff]  }
  0x45   : > { %942 = vmatprep.subr.bf16.mxu0 %v3147_v12  ;;  %2536 = vmatpush3.bf16.msra.mxu1 %v3168_v16  ;;  %v3218_v31 = vld [vmem:[#allocation3 + $0x38] ss:$12 sps:$4 sm:$0xff]   ;;  %4326 = vst [vmem:[#allocation16_spill] sm:$0xff] %v3220_v32  ;;  %v3226_v33 = vld [vmem:[#allocation3 + $0x20] ss:$12 sps:$4 sm:$0xff]   ;;  %s2382_s23 = sshll.u32 %s408_s12, 3 }
  0x46   : > { %2537 = vmatprep.subr.bf16.mxu1 %v3178_v19  ;;  %v3231_v34 = vld [vmem:[#allocation3 + $0x8] ss:$12 sps:$4 sm:$0xff]   ;;  %v3255_v55 = vld [vmem:[%s4282_s2] ss:$0 sm:$0xff]  ;;  %s2435_s19 = sshll.u32 %s3051_s21, 7  ;;  %s410_s13 = scalar_lea.vmem [#allocation8], %s2382_s23 }
  0x47   : > { %v3264_v60 = vld [vmem:[%s4285_s5] ss:$0 sm:$0xff]  ;;  %s2293_s15 = sshll.u32 %s410_s13, 4  ;;  %s4245_s25 = scalar_lea.hbm %s4291_s11, %s2435_s19  ;;  %s2294_s15 = int_to_ptr.vmem [resolvable:$true] %s2293_s15 }
  0x48   : > { %943 = vmatpush1.bf16.msra.mxu0 %v3163_v14  ;;  %s2280_s30 = scalar_lea.sflag [#allocation5], %s408_s12  ;;  %s2890_s14 = scalar_lea.vmem %s2294_s15, 128 }
  0x49   : > { %944 = vmatprep.subr.bf16.mxu0 %v3166_v15  ;;  %2538 = vmatpush3.bf16.msra.mxu1 %v3178_v19  ;;  %p2891_p10 = scmp.ne.s32.totalorder %s2294_s15, %s2890_s14  ;;  %s2969_s16 = smov [#allocation8]  }
  0x4a   : > { %2396 = vmatmul.mubr.msk.bf16.gmra.mxu0 %vm524_vm0, %v2774_v8  ;;  %2539 = vmatprep.subr.bf16.mxu1 %v3190_v23  ;;  %s2894_s21 = sshll.u32 %s2969_s16, 4  ;;  %s2895_s21 = int_to_ptr.vmem [resolvable:$false] %s2894_s21 }
  0x4b   : > { %2532 = vmatmul.mubr.msk.bf16.gmra.mxu1 %vm524_vm0, %v2776_v13  ;;  %589 = vmatprep.mubr.bf16.mxu0 %v4297_v0  ;;  %p2892_p7 = pnand %p2891_p10, %p3068_p5  ;;  %s2896_s23 = scalar_lea.vmem %s2895_s21, 256 }
  0x4c   : > { %945 = vmatpush1.bf16.msra.mxu0 %v3170_v17  ;;  %p2897_p11 = scmp.lt.s32.totalorder %s2294_s15, %s2895_s21  ;;  %p2898_p0 = scmp.lt.s32.totalorder %s2896_s23, %s2890_s14 }
  0x4d   : > { %946 = vmatprep.subr.bf16.mxu0 %v3176_v18  ;;  %2540 = vmatpush3.bf16.msra.mxu1 %v3190_v23  ;;  %p2893_p8 = pneg %p2892_p7 }
  0x4e   : > { %2541 = vmatprep.subr.bf16.mxu1 %v3198_v25  ;;  %p2899_p1 = por %p2898_p0, %p2897_p11 }
  0x50   : > { %947 = vmatpush1.bf16.msra.mxu0 %v3180_v20  ;;  %p2900_p3 = pnand %p2899_p1, %p2893_p8 }
  0x51   : > { %948 = vmatprep.subr.bf16.mxu0 %v3186_v21  ;;  %2542 = vmatpush3.bf16.msra.mxu1 %v3198_v25 }
  0x52   : > { %2397 = vmatmul.mubr.msk.bf16.gmra.mxu0 %vm524_vm0, %v2775_v9  ;;  %2543 = vmatprep.subr.bf16.mxu1 %v3208_v28  ;;  %v3275_v9 = vld [vmem:[%s4286_s6] ss:$0 sm:$0xff] }
  0x53   : > { %599 = vmatprep.mubr.bf16.mxu0 %v4297_v0 }
  0x54   : > { %949 = vmatpush1.bf16.msra.mxu0 %v3188_v22 }
  0x55   : > { %950 = vmatprep.subr.bf16.mxu0 %v3196_v24  ;;  %2544 = vmatpush3.bf16.msra.mxu1 %v3208_v28 }
  0x56   : > { %2545 = vmatprep.subr.bf16.mxu1 %v3218_v31 }
  0x58   : > { %951 = vmatpush1.bf16.msra.mxu0 %v3200_v26 }
  0x59   : > { %952 = vmatprep.subr.bf16.mxu0 %v3206_v27  ;;  %2546 = vmatpush3.bf16.msra.mxu1 %v3218_v31 }
  0x5a   : > { %2398 = vmatmul.mubr.msk.bf16.gmra.mxu0 %vm524_vm0, %v2776_v13  ;;  %2547 = vmatprep.subr.bf16.mxu1 %v3226_v33 }
  0x5b   : > { %972 = vmatprep.mubr.bf16.mxu0 %v4297_v0 }
  0x5c   : > { %953 = vmatpush1.bf16.msra.mxu0 %v3210_v29 }
  0x5d   : > { %954 = vmatprep.subr.bf16.mxu0 %v3216_v30  ;;  %2548 = vmatpush3.bf16.msra.mxu1 %v3226_v33 }
  0x5e   : > { %2549 = vmatprep.subr.bf16.mxu1 %v3231_v34 }
  0x60   : > { %955 = vmatpush1.bf16.msra.mxu0 %v3220_v32 }
  0x61   : > { %1197 = vmatprep.subr.bf16.mxu0 %v3143_v10  ;;  %2550 = vmatpush3.bf16.msra.mxu1 %v3231_v34 }
  0x62   : > { %2559 = vmatprep.subr.bf16.mxu1 %v3168_v16 }
 0x102   : > { %v571_v36 = vpop.f32.mrf.mxu0 }
 0x103   : > { %v2529_v37 = vpop.f32.mrf.mxu1 }
 0x104   : > { %v3236_v38 = vpop.f32.mrf.mxu0  ;;  %v704_v54 = vrot.slane %v2529_v37, 2 }
 0x105   : > { %v3238_v39 = vpop.f32.mrf.mxu1  ;;  %v675_v45 = vrot.slane %v3236_v38, 1 }
 0x106   : > { %v575_v41 = vpop.f32.mrf.mxu0  ;;  %v702_v46 = vrot.slane %v3238_v39, 2 }
 0x107   : > { %v2530_v42 = vpop.f32.mrf.mxu1 }
 0x108   : > { %v577_v43 = vpop.f32.mrf.mxu0  ;;  %v705_v3 = vrot.slane %v2530_v42, 2 }
 0x109   : > { %v647_v44 = vpop.f32.mrf.mxu1  ;;  %v676_v47 = vrot.slane %v577_v43, 1 }
 0x10a   : > { %v703_v48 = vrot.slane %v647_v44, 2  ;;  %v581_v49 = vpop.f32.mrf.mxu0  ;;  %v715_v42 = vsel %vm710_vm2, %v704_v54, %v705_v3 }
 0x10b   : > { %v692_v50 = vsel %vm685_vm1, %v675_v45, %v676_v47  ;;  %v3250_v52 = vpop.f32.mrf.mxu1 }
 0x10c   : > { %v694_v51 = vadd.f32 %v692_v50, %v571_v36  ;;  %v583_v53 = vpop.f32.mrf.mxu0  ;;  %v717_v56 = vsel %vm710_vm2, %v702_v46, %v703_v48  ;;  %v716_v4 = vsel %vm710_vm2, %v703_v48, %v704_v54 }
 0x10d   : > { %v677_v57 = vrot.slane %v583_v53, 1  ;;  %v660_v1 = vpop.f32.mrf.mxu1 }
 0x10e   : > { %v719_v58 = vadd.f32 %v717_v56, %v694_v51  ;;  %v585_v59 = vpop.f32.mrf.mxu0  ;;  %v706_v43 = vrot.slane %v660_v1, 2 }
 0x10f   : > { %v691_v61 = vsel %vm685_vm1, %v676_v47, %v677_v57  ;;  %v3280_v36 = vpop.f32.mrf.mxu1 }
 0x110   : > { %v733_v62 = vadd.f32 %v3255_v55, %v719_v58  ;;  %v695_v63 = vadd.f32 %v691_v61, %v575_v41  ;;  %v587_v2 = vpop.f32.mrf.mxu0  ;;  %v714_v54 = vsel %vm710_vm2, %v705_v3, %v706_v43 }
 0x111   : > { %v678_v5 = vrot.slane %v587_v2, 1  ;;  %v663_v51 = vpop.f32.mrf.mxu1 }
 0x112   : > { %v778_v6 = vmul.f32 %v3264_v60, %v733_v62  ;;  %v720_v7 = vadd.f32 %v716_v4, %v695_v63  ;;  %v591_v8 = vpop.f32.mrf.mxu0  ;;  %v707_v62 = vrot.slane %v663_v51, 2 }
 0x113   : > { %v690_v13 = vsel %vm685_vm1, %v677_v57, %v678_v5 }
 0x114   : > { %v734_v35 = vadd.f32 %v3255_v55, %v720_v7  ;;  %v696_v37 = vadd.f32 %v690_v13, %v581_v49  ;;  %v593_v41 = vpop.f32.mrf.mxu0  ;;  %v792_v47 = vadd.f32 %v3275_v9, %v778_v6  ;;  %v713_v3 = vsel %vm710_vm2, %v706_v43, %v707_v62 }
 0x115   : > { %v679_v44 = vrot.slane %v593_v41, 1  ;;  %v708_v41 = vrot.slane %v3250_v52, 2 }
 0x116   : > { %v779_v48 = vmul.f32 %v3264_v60, %v734_v35  ;;  %v721_v50 = vadd.f32 %v715_v42, %v696_v37  ;;  %v595_v53 = vpop.f32.mrf.mxu0  ;;  %v800_v1 = vmax.f32 %v792_v47, 0.0 }
 0x117   : > { %v689_v56 = vsel %vm685_vm1, %v678_v5, %v679_v44 }
 0x118   : > { %v793_v57 = vadd.f32 %v3275_v9, %v779_v48  ;;  %v735_v49 = vadd.f32 %v3255_v55, %v721_v50  ;;  %v697_v58 = vadd.f32 %v689_v56, %v585_v59  ;;  %v597_v61 = vpop.f32.mrf.mxu0 }
 0x119   : > { %v680_v63 = vrot.slane %v597_v61, 1 }
 0x11a   : > { %v722_v2 = vadd.f32 %v714_v54, %v697_v58  ;;  %v601_v4 = vpop.f32.mrf.mxu0  ;;  %v801_v6 = vmax.f32 %v793_v57, 0.0  ;;  %v780_v7 = vmul.f32 %v3264_v60, %v735_v49  ;;  %v709_v57 = vrot.slane %v3280_v36, 2 }
 0x11b   : > { %v688_v5 = vsel %vm685_vm1, %v679_v44, %v680_v63  ;;  %v712_v49 = vsel %vm710_vm2, %v707_v62, %v708_v41 }
 0x11c   : > { %v736_v13 = vadd.f32 %v3255_v55, %v722_v2  ;;  %v698_v35 = vadd.f32 %v688_v5, %v591_v8  ;;  %v603_v37 = vpop.f32.mrf.mxu0  ;;  %v808_v59 = vpack.c.bf16 %v801_v6, %v800_v1  ;;  %v794_v51 = vadd.f32 %v3275_v9, %v780_v7 }
 0x11d   : > { %v681_v42 = vrot.slane %v603_v37, 1  ;;  %v711_v5 = vsel %vm710_vm2, %v708_v41, %v709_v57  ;;  %v718_v38 = vsel %vm710_vm2, %v709_v57, %v702_v46 }
 0x11e   : > { %v723_v47 = vadd.f32 %v713_v3, %v698_v35  ;;  %v605_v48 = vpop.f32.mrf.mxu0  ;;  %973 = vmatmul.mubr.bf16.vlgmr.msra.gmra.mxu0 %v808_v59  ;;  %2551 = vmatprep.mubr.bf16.mxu1 %v808_v59  ;;  %v781_v50 = vmul.f32 %v3264_v60, %v736_v13  ;;  %v802_v54 = vmax.f32 %v794_v51, 0.0 }
 0x11f   : > { %v687_v44 = vsel %vm685_vm1, %v680_v63, %v681_v42  ;;  %982 = vmatprep.mubr.bf16.mxu0 %v4297_v0  ;;  %1198 = vmatpush1.bf16.msra.mxu0 %v3145_v11 }
 0x120   : > { %v737_v52 = vadd.f32 %v3255_v55, %v723_v47  ;;  %v699_v8 = vadd.f32 %v687_v44, %v595_v53  ;;  %v607_v43 = vpop.f32.mrf.mxu0  ;;  %v795_v56 = vadd.f32 %v3275_v9, %v781_v50  ;;  %1199 = vmatprep.subr.bf16.mxu0 %v3147_v12 }
 0x121   : > { %v682_v58 = vrot.slane %v607_v43, 1 }
 0x122   : > { %v724_v61 = vadd.f32 %v712_v49, %v699_v8  ;;  %v803_v63 = vmax.f32 %v795_v56, 0.0  ;;  %v782_v1 = vmul.f32 %v3264_v60, %v737_v52 }
 0x123   : > { %v686_v2 = vsel %vm685_vm1, %v681_v42, %v682_v58  ;;  %v693_v53 = vsel %vm685_vm1, %v682_v58, %v675_v45  ;;  %1200 = vmatpush1.bf16.msra.mxu0 %v3163_v14  ;;  %v3374_v58 = vadd.s32 16, %v3240_v40 }
 0x124   : > { %v738_v36 = vadd.f32 %v3255_v55, %v724_v61  ;;  %v700_v6 = vadd.f32 %v686_v2, %v601_v4  ;;  %v701_v62 = vadd.f32 %v693_v53, %v605_v48  ;;  %v809_v7 = vpack.c.bf16 %v803_v63, %v802_v54  ;;  %1201 = vmatprep.subr.bf16.mxu0 %v3166_v15 }
 0x125   : > { %v796_v13 = vadd.f32 %v3275_v9, %v782_v1  ;;  %4327 = vst [vmem:[#allocation17_spill] sm:$0xff] %v3374_v58  ;;  %v3379_v2 = vadd.s32 8, %v3240_v40  ;;  %v744_v53 = vadd.s32 32, %v3240_v40 }
 0x126   : > { %v725_v45 = vadd.f32 %v711_v5, %v700_v6  ;;  %v726_v35 = vadd.f32 %v718_v38, %v701_v62  ;;  %983 = vmatmul.mubr.bf16.gmra.mxu0 %v809_v7  ;;  %2552 = vmatmul.mubr.bf16.vlgmr.msra.gmra.mxu1 %v809_v7  ;;  %v783_v4 = vmul.f32 %v3264_v60, %v738_v36  ;;  %v3383_v36 = vadd.s32 24, %v3240_v40 }
 0x127   : > { %992 = vmatprep.mubr.bf16.mxu0 %v4297_v0  ;;  %2560 = vmatpush3.bf16.msra.mxu1 %v3168_v16  ;;  %v804_v46 = vmax.f32 %v796_v13, 0.0  ;;  %4328 = vst [vmem:[#allocation18_spill] sm:$0xff] %v3379_v2  ;;  %v750_v6 = vand.u32 15, %v3374_v58  ;;  %v746_v5 = vadd.s32 48, %v3240_v40  ;;  %v4296_v13 = vand.u32 15, %v3379_v2 }
 0x128   : > { %v739_v37 = vadd.f32 %v3255_v55, %v725_v45  ;;  %v740_v59 = vadd.f32 %v3255_v55, %v726_v35  ;;  %v797_v39 = vadd.f32 %v3275_v9, %v783_v4  ;;  %2561 = vmatprep.subr.bf16.mxu1 %v3178_v19  ;;  %1202 = vmatpush1.bf16.msra.mxu0 %v3170_v17  ;;  %v3392_v35 = vadd.s32 56, %v3240_v40 }
 0x129   : > { %1203 = vmatprep.subr.bf16.mxu0 %v3176_v18  ;;  %4329 = vst [vmem:[#allocation19_spill] sm:$0xff] %v3383_v36  ;;  %vm3396_vm4 = vcmp.eq.s32.totalorder %v750_v6, 0  ;;  %vm3414_vm5 = vcmp.eq.s32.totalorder %v4296_v13, 13  ;;  %v3428_v6 = vld [vmem:[%s4288_s8] ss:$0 sm:$0xff]  ;;  %v4340_v13 = vmov 0 }
 0x12a   : > { %v805_v41 = vmax.f32 %v797_v39, 0.0  ;;  %v784_v3 = vmul.f32 %v3264_v60, %v739_v37  ;;  %v785_v42 = vmul.f32 %v3264_v60, %v740_v59  ;;  %4330 = vst [vmem:[#allocation20_spill] sm:$0xff] %v3392_v35  ;;  %v752_v59 = vand.u32 15, %v744_v53 }
 0x12b   : > { %2562 = vmatpush3.bf16.msra.mxu1 %v3178_v19  ;;  %v4304_v39 = vand.u32 15, %v3383_v36 }
 0x12c   : > { %v810_v47 = vpack.c.bf16 %v805_v41, %v804_v46  ;;  %v798_v48 = vadd.f32 %v3275_v9, %v784_v3  ;;  %v799_v55 = vadd.f32 %v3275_v9, %v785_v42  ;;  %2563 = vmatprep.subr.bf16.mxu1 %v3190_v23  ;;  %1204 = vmatpush1.bf16.msra.mxu0 %v3180_v20  ;;  %v4331_v46 = vmov 0 }
 0x12d   : > { %1205 = vmatprep.subr.bf16.mxu0 %v3186_v21  ;;  %v4332_v46 = vsel %vm3396_vm4, 4294967295, %v4331_v46  ;;  %v754_v42 = vand.u32 15, %v746_v5  ;;  %vm3434_vm6 = vcmp.eq.s32.totalorder %v752_v59, 0  ;;  %vm3440_vm7 = vcmp.eq.s32.totalorder %v4304_v39, 13 }
 0x12e   : > { %993 = vmatmul.mubr.bf16.gmra.mxu0 %v810_v47  ;;  %2555 = vmatprep.mubr.bf16.mxu1 %v810_v47  ;;  %v806_v50 = vmax.f32 %v798_v48, 0.0  ;;  %v807_v51 = vmax.f32 %v799_v55, 0.0  ;;  %4333 = vst [vmem:[#allocation21_spill] sm:$0xff] %v4332_v46  ;;  %v3401_v47 = vadd.s32 40, %v3240_v40  ;;  %v4341_v13 = vsel %vm3440_vm7, 4294967295, %v4340_v13 }
 0x12f   : > { %1002 = vmatprep.mubr.bf16.mxu0 %v4297_v0  ;;  %2564 = vmatpush3.bf16.msra.mxu1 %v3190_v23  ;;  %4342 = vst [vmem:[#allocation24_spill] sm:$0xff] %v4341_v13  ;;  %vm3452_vm8 = vcmp.eq.s32.totalorder %v754_v42, 0  ;;  %v748_v46 = vand.u32 15, %v3240_v40  ;;  %v4345_v59 = vand.u32 15, %v3392_v35 }
 0x130   : > { %v811_v44 = vpack.c.bf16 %v807_v51, %v806_v50  ;;  %2565 = vmatprep.subr.bf16.mxu1 %v3198_v25  ;;  %1206 = vmatpush1.bf16.msra.mxu0 %v3188_v22  ;;  %4334 = vst [vmem:[#allocation22_spill] sm:$0xff] %v3401_v47  ;;  %v3408_v50 = vld [vmem:[%s4287_s7] ss:$0 sm:$0xff]  ;;  %v4348_v35 = vand.u32 15, %v3401_v47 }
 0x131   : > { %1207 = vmatprep.subr.bf16.mxu0 %v3196_v24  ;;  %vm3462_vm9 = vcmp.eq.s32.totalorder %v4345_v59, 13  ;;  %vm3487_vm11 = vcmp.eq.s32.totalorder %v748_v46, 0 }
 0x132   : > { %2556 = vmatmul.mubr.bf16.gmra.mxu1 %v811_v44  ;;  %vm3478_vm10 = vcmp.eq.s32.totalorder %v4348_v35, 13 }
 0x133   : > { %2566 = vmatpush3.bf16.msra.mxu1 %v3198_v25 }
 0x134   : > { %2567 = vmatprep.subr.bf16.mxu1 %v3208_v28  ;;  %1208 = vmatpush1.bf16.msra.mxu0 %v3200_v26 }
 0x135   : > { %1209 = vmatprep.subr.bf16.mxu0 %v3206_v27 }
 0x136   : > { %1003 = vmatmul.mubr.bf16.gmra.mxu0 %v811_v44 }
 0x137   : > { %2568 = vmatpush3.bf16.msra.mxu1 %v3208_v28  ;;  %1229 = vmatprep.mubr.bf16.mxu0 %v4297_v0 }
 0x138   : > { %2569 = vmatprep.subr.bf16.mxu1 %v3218_v31  ;;  %1210 = vmatpush1.bf16.msra.mxu0 %v3210_v29 }
 0x139   : > { %1211 = vmatprep.subr.bf16.mxu0 %v3216_v30 }
 0x13b   : > { %2570 = vmatpush3.bf16.msra.mxu1 %v3218_v31 }
 0x13c   : > { %2571 = vmatprep.subr.bf16.mxu1 %v3226_v33  ;;  %1212 = vmatpush1.bf16.msra.mxu0 %v3220_v32 }
 0x13d   : > { %1512 = vmatprep.subr.bf16.mxu0 %v3143_v10 }
 0x13f   : > { %2572 = vmatpush3.bf16.msra.mxu1 %v3226_v33 }
 0x140   : > { %2573 = vmatprep.subr.bf16.mxu1 %v3231_v34 }
 0x143   : > { %2574 = vmatpush3.bf16.msra.mxu1 %v3231_v34 }
 0x144   : > { %2583 = vmatprep.subr.bf16.mxu1 %v3168_v16 }
 0x1de   : > { %v3367_v52 = vpop.f32.mrf.mxu0 }
 0x1df   : > { %v4299_v48 = vrot.slane %v3367_v52, 7 }
 0x1e0   : > { %v3369_v8 = vpop.f32.mrf.mxu0 }
 0x1e2   : > { %v978_v43 = vpop.f32.mrf.mxu0 }
 0x1e3   : > { %v1079_v4 = vrot.slane %v978_v43, 7 }
 0x1e4   : > { %v980_v56 = vpop.f32.mrf.mxu0 }
 0x1e5   : > { %v1093_v53 = vsel %vm1086_vm3, %v4299_v48, %v1079_v4 }
 0x1e6   : > { %v984_v57 = vpop.f32.mrf.mxu0  ;;  %v3371_v49 = vpop.f32.mrf.mxu1  ;;  %v1140_v10 = vadd.f32 %v1093_v53, %v980_v56 }
 0x1e7   : > { %v1080_v38 = vrot.slane %v984_v57, 7  ;;  %v1111_v55 = vrot.slane %v3371_v49, 1 }
 0x1e8   : > { %v986_v61 = vpop.f32.mrf.mxu0  ;;  %v3376_v54 = vpop.f32.mrf.mxu1 }
 0x1e9   : > { %v1092_v51 = vsel %vm1086_vm3, %v1079_v4, %v1080_v38  ;;  %v1109_v47 = vrot.slane %v3376_v54, 1 }
 0x1ea   : > { %v988_v63 = vpop.f32.mrf.mxu0  ;;  %v2554_v1 = vpop.f32.mrf.mxu1  ;;  %v1103_v4 = vsel %vm3396_vm4, %v3408_v50, %v1092_v51 }
 0x1eb   : > { %v1081_v41 = vrot.slane %v988_v63, 7  ;;  %v1112_v0 = vrot.slane %v2554_v1, 1 }
 0x1ec   : > { %v990_v62 = vpop.f32.mrf.mxu0  ;;  %v3386_v7 = vpop.f32.mrf.mxu1 }
 0x1ed   : > { %v4300_v37 = vrot.slane %v3386_v7, 1  ;;  %v1091_v48 = vsel %vm1086_vm3, %v1080_v38, %v1081_v41 }
 0x1ee   : > { %v994_v45 = vpop.f32.mrf.mxu0 }
 0x1ef   : > { %v1082_v44 = vrot.slane %v994_v45, 7  ;;  %v1122_v5 = vsel %vm685_vm1, %v4300_v37, %v1111_v55  ;;  %v4337_v45 = vmov 0 }
 0x1f0   : > { %v996_v3 = vpop.f32.mrf.mxu0  ;;  %v4338_v45 = vsel %vm3434_vm6, 4294967295, %v4337_v45  ;;  %v1132_v1 = vsel %vm3414_vm5, %v3428_v6, %v1122_v5 }
 0x1f1   : > { %4339 = vst [vmem:[#allocation23_spill] sm:$0xff] %v4338_v45  ;;  %v1090_v58 = vsel %vm1086_vm3, %v1081_v41, %v1082_v44  ;;  %v1142_v41 = vadd.f32 %v1091_v48, %v990_v62  ;;  %v1148_v48 = vadd.f32 %v1140_v10, %v1132_v1 }
 0x1f2   : > { %v998_v57 = vpop.f32.mrf.mxu0  ;;  %v3418_v63 = vpop.f32.mrf.mxu1  ;;  %v1105_v53 = vsel %vm3434_vm6, %v3408_v50, %v1090_v58 }
 0x1f3   : > { %v1083_v36 = vrot.slane %v998_v57, 7  ;;  %v1121_v57 = vsel %vm685_vm1, %v1111_v55, %v1112_v0  ;;  %v1143_v10 = vadd.f32 %v1105_v53, %v996_v3 }
 0x1f4   : > { %v1000_v49 = vpop.f32.mrf.mxu0  ;;  %v1063_v37 = vpop.f32.mrf.mxu1 }
 0x1f5   : > { %v1113_v39 = vrot.slane %v1063_v37, 1  ;;  %v1141_v37 = vadd.f32 %v1103_v4, %v986_v61  ;;  %v1115_v4 = vrot.slane %v3418_v63, 1 }
 0x1f6   : > { %v1004_v51 = vpop.f32.mrf.mxu0  ;;  %v2558_v38 = vpop.f32.mrf.mxu1 }
 0x1f7   : > { %v1120_v42 = vsel %vm685_vm1, %v1112_v0, %v1113_v39  ;;  %v1084_v56 = vrot.slane %v1004_v51, 7  ;;  %v1089_v0 = vsel %vm1086_vm3, %v1082_v44, %v1083_v36  ;;  %v1116_v51 = vrot.slane %v2558_v38, 1  ;;  %v3495_v44 = vld [vmem:[%s4284_s4] ss:$0 sm:$0xff] }
 0x1f8   : > { %v1134_v5 = vsel %vm3440_vm7, %v3428_v6, %v1120_v42  ;;  %v1006_v59 = vpop.f32.mrf.mxu0  ;;  %v1066_v62 = vpop.f32.mrf.mxu1  ;;  %v1149_v13 = vadd.f32 %v1141_v37, %v1121_v57  ;;  %v1162_v54 = vadd.f32 %v3495_v44, %v1148_v48 }
 0x1f9   : > { %v1150_v55 = vadd.f32 %v1142_v41, %v1134_v5  ;;  %v1088_v58 = vsel %vm1086_vm3, %v1083_v36, %v1084_v56  ;;  %v1114_v42 = vrot.slane %v1066_v62, 1  ;;  %v1144_v36 = vadd.f32 %v1089_v0, %v1000_v49 }
 0x1fa   : > { %v1008_v35 = vpop.f32.mrf.mxu0  ;;  %v1107_v63 = vsel %vm3452_vm8, %v3408_v50, %v1088_v58  ;;  %v1124_v57 = vsel %vm685_vm1, %v1116_v51, %v1109_v47  ;;  %v4353_v5 = vrot.slane %v3367_v52, 7  ;;  %v1163_v48 = vadd.f32 %v3495_v44, %v1149_v13 }
 0x1fb   : > { %v1085_v1 = vrot.slane %v1008_v35, 7  ;;  %v1118_v46 = vsel %vm685_vm1, %v1114_v42, %v1115_v4  ;;  %v1119_v38 = vsel %vm685_vm1, %v1113_v39, %v1114_v42  ;;  %v1164_v3 = vadd.f32 %v3495_v44, %v1150_v55 }
 0x1fc   : > { %v1136_v37 = vsel %vm3478_vm10, %v3428_v6, %v1118_v46  ;;  %v1151_v41 = vadd.f32 %v1143_v10, %v1119_v38  ;;  %v1010_v49 = vpop.f32.mrf.mxu0  ;;  %v1145_v0 = vadd.f32 %v1107_v63, %v1006_v59  ;;  %v4354_v42 = vrot.slane %v3386_v7, 1 }
 0x1fd   : > { %v1152_v53 = vadd.f32 %v1144_v36, %v1136_v37  ;;  %v1094_v62 = vsel %vm1086_vm3, %v1085_v1, %v4353_v5  ;;  %v1087_v39 = vsel %vm1086_vm3, %v1084_v56, %v1085_v1  ;;  %v1170_v56 = vmul.f32 %v3264_v60, %v1162_v54 }
 0x1fe   : > { %v1165_v55 = vadd.f32 %v3495_v44, %v1151_v41  ;;  %v1101_v58 = vsel %vm3487_vm11, %v3408_v50, %v1094_v62  ;;  %v1123_v52 = vsel %vm685_vm1, %v1109_v47, %v4354_v42  ;;  %v1146_v36 = vadd.f32 %v1087_v39, %v1010_v49 }
 0x1ff   : > { %v1166_v35 = vadd.f32 %v3495_v44, %v1152_v53  ;;  %v1139_v10 = vadd.f32 %v1101_v58, %v3369_v8  ;;  %v1172_v13 = vmul.f32 %v3264_v60, %v1164_v3  ;;  %v1117_v59 = vsel %vm685_vm1, %v1115_v4, %v1116_v51 }
 0x200   : > { %v1138_v1 = vsel %vm3462_vm9, %v3428_v6, %v1124_v57  ;;  %v1173_v47 = vmul.f32 %v3264_v60, %v1165_v55  ;;  %v1171_v8 = vmul.f32 %v3264_v60, %v1163_v48  ;;  %v1153_v38 = vadd.f32 %v1145_v0, %v1117_v59 }
 0x201   : > { %v1147_v7 = vadd.f32 %v1139_v10, %v1123_v52  ;;  %v1154_v63 = vadd.f32 %v1146_v36, %v1138_v1  ;;  %v1174_v46 = vmul.f32 %v3264_v60, %v1166_v35  ;;  %v1180_v3 = vadd.f32 %v3275_v9, %v1172_v13 }
 0x202   : > { %v1178_v4 = vadd.f32 %v3275_v9, %v1170_v56  ;;  %v1181_v41 = vadd.f32 %v3275_v9, %v1173_v47  ;;  %v1179_v57 = vadd.f32 %v3275_v9, %v1171_v8  ;;  %v1167_v53 = vadd.f32 %v3495_v44, %v1153_v38 }
 0x203   : > { %v1161_v54 = vadd.f32 %v3495_v44, %v1147_v7  ;;  %v1168_v37 = vadd.f32 %v3495_v44, %v1154_v63  ;;  %v1182_v49 = vadd.f32 %v3275_v9, %v1174_v46  ;;  %v1188_v39 = vmax.f32 %v1180_v3, 0.0 }
 0x204   : > { %v1186_v0 = vmax.f32 %v1178_v4, 0.0  ;;  %v1189_v55 = vmax.f32 %v1181_v41, 0.0  ;;  %v1187_v42 = vmax.f32 %v1179_v57, 0.0  ;;  %v1175_v52 = vmul.f32 %v3264_v60, %v1167_v53 }
 0x205   : > { %v1169_v51 = vmul.f32 %v3264_v60, %v1161_v54  ;;  %v1176_v62 = vmul.f32 %v3264_v60, %v1168_v37  ;;  %v1190_v58 = vmax.f32 %v1182_v49, 0.0  ;;  %v4355_v13 = vmov 0  }
 0x206   : > { %v1194_v10 = vpack.c.bf16 %v1188_v39, %v1187_v42  ;;  %v1183_v59 = vadd.f32 %v3275_v9, %v1175_v52 }
 0x207   : > { %v1177_v5 = vadd.f32 %v3275_v9, %v1169_v51  ;;  %v1184_v36 = vadd.f32 %v3275_v9, %v1176_v62  ;;  %v1195_v56 = vpack.c.bf16 %v1190_v58, %v1189_v55 }
 0x208   : > { %v1191_v7 = vmax.f32 %v1183_v59, 0.0 }
 0x209   : > { %v1185_v48 = vmax.f32 %v1177_v5, 0.0  ;;  %v1192_v1 = vmax.f32 %v1184_v36, 0.0  ;;  %v4360_v36 = vld [vmem:[#allocation18_spill] sm:$0xff] }
 0x20b   : > { %v1193_v35 = vpack.c.bf16 %v1186_v0, %v1185_v48  ;;  %v1196_v63 = vpack.c.bf16 %v1192_v1, %v1191_v7 }
 0x20d   : > { %1230 = vmatmul.mubr.bf16.vlgmr.msra.gmra.mxu0 %v1193_v35  ;;  %2575 = vmatprep.mubr.bf16.mxu1 %v1193_v35 }
 0x20e   : > { %2576 = vmatmul.mubr.bf16.vlgmr.msra.gmra.mxu1 %v1194_v10  ;;  %1239 = vmatprep.mubr.bf16.mxu0 %v4355_v13 }
 0x20f   : > { %2579 = vmatprep.mubr.bf16.mxu1 %v1195_v56  ;;  %1513 = vmatpush1.bf16.msra.mxu0 %v3145_v11  ;;  %v4356_v11 = vld [vmem:[#allocation16_spill] sm:$0xff] }
 0x210   : > { %2584 = vmatpush3.bf16.msra.mxu1 %v3168_v16  ;;  %1514 = vmatprep.subr.bf16.mxu0 %v3147_v12  ;;  %v4357_v12 = vld [vmem:[#allocation15_spill] sm:$0xff] }
 0x211   : > { %2585 = vmatprep.subr.bf16.mxu1 %v3178_v19 }
 0x213   : > { %1515 = vmatpush1.bf16.msra.mxu0 %v3163_v14 }
 0x214   : > { %2586 = vmatpush3.bf16.msra.mxu1 %v3178_v19  ;;  %1516 = vmatprep.subr.bf16.mxu0 %v3166_v15 }
 0x215   : > { %1240 = vmatmul.mubr.bf16.gmra.mxu0 %v1194_v10  ;;  %2587 = vmatprep.subr.bf16.mxu1 %v3190_v23 }
 0x216   : > { %2580 = vmatmul.mubr.bf16.gmra.mxu1 %v1196_v63  ;;  %1249 = vmatprep.mubr.bf16.mxu0 %v4355_v13 }
 0x217   : > { %1517 = vmatpush1.bf16.msra.mxu0 %v3170_v17 }
 0x218   : > { %2588 = vmatpush3.bf16.msra.mxu1 %v3190_v23  ;;  %1518 = vmatprep.subr.bf16.mxu0 %v3176_v18 }
 0x219   : > { %2589 = vmatprep.subr.bf16.mxu1 %v3198_v25 }
 0x21b   : > { %1519 = vmatpush1.bf16.msra.mxu0 %v3180_v20 }
 0x21c   : > { %2590 = vmatpush3.bf16.msra.mxu1 %v3198_v25  ;;  %1520 = vmatprep.subr.bf16.mxu0 %v3186_v21 }
 0x21d   : > { %1250 = vmatmul.mubr.bf16.gmra.mxu0 %v1195_v56  ;;  %2591 = vmatprep.subr.bf16.mxu1 %v3208_v28  ;;  %v4361_v56 = vand.u32 15, %v4360_v36 }
 0x21e   : > { %1259 = vmatprep.mubr.bf16.mxu0 %v4355_v13 }
 0x21f   : > { %1521 = vmatpush1.bf16.msra.mxu0 %v3188_v22  ;;  %vm3633_vm12 = vcmp.eq.s32.totalorder %v4361_v56, 12 }
 0x220   : > { %2592 = vmatpush3.bf16.msra.mxu1 %v3208_v28  ;;  %1522 = vmatprep.subr.bf16.mxu0 %v3196_v24 }
 0x221   : > { %2593 = vmatprep.subr.bf16.mxu1 %v3218_v31 }
 0x223   : > { %1523 = vmatpush1.bf16.msra.mxu0 %v3200_v26 }
 0x224   : > { %2594 = vmatpush3.bf16.msra.mxu1 %v3218_v31  ;;  %1524 = vmatprep.subr.bf16.mxu0 %v3206_v27 }
 0x225   : > { %1260 = vmatmul.mubr.bf16.gmra.mxu0 %v1196_v63  ;;  %2595 = vmatprep.subr.bf16.mxu1 %v3226_v33 }
 0x226   : > { %1544 = vmatprep.mubr.bf16.mxu0 %v4355_v13 }
 0x227   : > { %1525 = vmatpush1.bf16.msra.mxu0 %v3210_v29 }
 0x228   : > { %2596 = vmatpush3.bf16.msra.mxu1 %v3226_v33  ;;  %1526 = vmatprep.subr.bf16.mxu0 %v3216_v30 }
 0x229   : > { %2597 = vmatprep.subr.bf16.mxu1 %v3231_v34 }
 0x22b   : > { %1527 = vmatpush1.bf16.msra.mxu0 %v4356_v11 }
 0x22c   : > { %2598 = vmatpush3.bf16.msra.mxu1 %v3231_v34  ;;  %1664 = vmatprep.subr.bf16.mxu0 %v4357_v12 }
 0x22d   : > { %2603 = vmatprep.subr.bf16.mxu1 %v3168_v16 }
 0x2cd   : > { %v3588_v14 = vpop.f32.mrf.mxu0 }
 0x2ce   : > { %v2577_v15 = vpop.f32.mrf.mxu1  ;;  %v1335_v20 = vrot.slane %v3588_v14, 7 }
 0x2cf   : > { %v3590_v17 = vpop.f32.mrf.mxu0  ;;  %v1361_v16 = vrot.slane %v2577_v15, 1 }
 0x2d0   : > { %v3592_v18 = vpop.f32.mrf.mxu1 }
 0x2d1   : > { %v1235_v19 = vpop.f32.mrf.mxu0  ;;  %v1359_v56 = vrot.slane %v3592_v18, 1 }
 0x2d2   : > { %v1336_v21 = vrot.slane %v1235_v19, 7  ;;  %v2578_v22 = vpop.f32.mrf.mxu1 }
 0x2d3   : > { %v1237_v23 = vpop.f32.mrf.mxu0  ;;  %v1362_v30 = vrot.slane %v2578_v22, 1 }
 0x2d4   : > { %v1349_v24 = vsel %vm1086_vm3, %v1335_v20, %v1336_v21  ;;  %v3599_v25 = vpop.f32.mrf.mxu1 }
 0x2d5   : > { %v1360_v26 = vrot.slane %v3599_v25, 1  ;;  %v1241_v27 = vpop.f32.mrf.mxu0  ;;  %v1384_v31 = vadd.f32 %v1349_v24, %v1237_v23  ;;  %v1371_v43 = vsel %vm685_vm1, %v1361_v16, %v1362_v30 }
 0x2d6   : > { %v1337_v28 = vrot.slane %v1241_v27, 7  ;;  %v3602_v29 = vpop.f32.mrf.mxu1 }
 0x2d7   : > { %v1372_v33 = vsel %vm685_vm1, %v1360_v26, %v1361_v16  ;;  %v1243_v34 = vpop.f32.mrf.mxu0  ;;  %v1365_v7 = vrot.slane %v3602_v29, 1 }
 0x2d8   : > { %v1376_v47 = vsel %vm3414_vm5, %v3428_v6, %v1372_v33  ;;  %v1348_v46 = vsel %vm1086_vm3, %v1336_v21, %v1337_v28  ;;  %v1320_v8 = vpop.f32.mrf.mxu1 }
 0x2d9   : > { %v1392_v38 = vadd.f32 %v1384_v31, %v1376_v47  ;;  %v1353_v3 = vsel %vm3396_vm4, %v3408_v50, %v1348_v46  ;;  %v1363_v37 = vrot.slane %v1320_v8, 1  ;;  %v1245_v4 = vpop.f32.mrf.mxu0 }
 0x2da   : > { %v1385_v51 = vadd.f32 %v1353_v3, %v1243_v34  ;;  %v1338_v41 = vrot.slane %v1245_v4, 7  ;;  %v3616_v49 = vpop.f32.mrf.mxu1 }
 0x2db   : > { %v3619_v57 = vadd.f32 %v3495_v44, %v1392_v38  ;;  %v1370_v53 = vsel %vm685_vm1, %v1362_v30, %v1363_v37  ;;  %v1247_v5 = vpop.f32.mrf.mxu0  ;;  %v1366_v4 = vrot.slane %v3616_v49, 1 }
 0x2dc   : > { %v1393_v62 = vadd.f32 %v1385_v51, %v1371_v43  ;;  %v1347_v39 = vsel %vm1086_vm3, %v1337_v28, %v1338_v41  ;;  %v1323_v48 = vpop.f32.mrf.mxu1  ;;  %v1378_v52 = vsel %vm3440_vm7, %v3428_v6, %v1370_v53 }
 0x2dd   : > { %v1386_v0 = vadd.f32 %v1347_v39, %v1247_v5  ;;  %v1251_v55 = vpop.f32.mrf.mxu0  ;;  %v1364_v35 = vrot.slane %v1323_v48, 1  ;;  %v1416_v1 = vrot.slane %v3619_v57, 1  ;;  %v1432_v12 = vrot.slane %v3619_v57, 2  ;;  %v4365_v48 = vld [vmem:[#allocation19_spill] sm:$0xff] }
 0x2de   : > { %v1401_v58 = vadd.f32 %v3495_v44, %v1393_v62  ;;  %v1339_v10 = vrot.slane %v1251_v55, 7  ;;  %v4373_v55 = vld [vmem:[#allocation20_spill] sm:$0xff] }
 0x2df   : > { %v1394_v63 = vadd.f32 %v1386_v0, %v1378_v52  ;;  %v1253_v11 = vpop.f32.mrf.mxu0  ;;  %v1368_v23 = vsel %vm685_vm1, %v1364_v35, %v1365_v7  ;;  %v1369_v27 = vsel %vm685_vm1, %v1363_v37, %v1364_v35  ;;  %v4366_v0 = vand.u32 15, %v4365_v48 }
 0x2e0   : > { %v1417_v15 = vrot.slane %v1401_v58, 1  ;;  %v1433_v19 = vrot.slane %v1401_v58, 2  ;;  %v1346_v21 = vsel %vm1086_vm3, %v1338_v41, %v1339_v10  ;;  %v1380_v62 = vsel %vm3478_vm10, %v3428_v6, %v1368_v23 }
 0x2e1   : > { %v1402_v22 = vadd.f32 %v3495_v44, %v1394_v63  ;;  %v1355_v16 = vsel %vm3434_vm6, %v3408_v50, %v1346_v21  ;;  %v1255_v28 = vpop.f32.mrf.mxu0  ;;  %vm3672_vm13 = vcmp.eq.s32.totalorder %v4366_v0, 12 }
 0x2e2   : > { %v1428_v29 = vsel %vm685_vm1, %v1416_v1, %v1417_v15  ;;  %v1444_v30 = vsel %vm710_vm2, %v1432_v12, %v1433_v19  ;;  %v1387_v31 = vadd.f32 %v1355_v16, %v1253_v11  ;;  %v1340_v33 = vrot.slane %v1255_v28, 7 }
 0x2e3   : > { %v1448_v34 = vsel %vm3633_vm12, 0.0, %v1444_v30  ;;  %v1456_v47 = vmax.f32 %v3619_v57, %v1428_v29  ;;  %v1418_v46 = vrot.slane %v1402_v22, 1  ;;  %v1434_v8 = vrot.slane %v1402_v22, 2  ;;  %v1257_v38 = vpop.f32.mrf.mxu0 }
 0x2e4   : > { %v1395_v54 = vadd.f32 %v1387_v31, %v1369_v27  ;;  %v1345_v3 = vsel %vm1086_vm3, %v1339_v10, %v1340_v33  ;;  %v1367_v11 = vsel %vm685_vm1, %v1365_v7, %v1366_v4  ;;  %v1374_v7 = vsel %vm685_vm1, %v1366_v4, %v1359_v56 }
 0x2e5   : > { %v1464_v37 = vmax.f32 %v1456_v47, %v1448_v34  ;;  %v1427_v51 = vsel %vm685_vm1, %v1417_v15, %v1418_v46  ;;  %v1388_v41 = vadd.f32 %v1345_v3, %v1257_v38  ;;  %v1261_v43 = vpop.f32.mrf.mxu0  ;;  %v1443_v49 = vsel %vm710_vm2, %v1433_v19, %v1434_v8  ;;  %v4369_v38 = vld [vmem:[#allocation22_spill] sm:$0xff] }
 0x2e6   : > { %v1457_v53 = vmax.f32 %v1401_v58, %v1427_v51  ;;  %v1403_v5 = vadd.f32 %v3495_v44, %v1395_v54  ;;  %v1341_v39 = vrot.slane %v1261_v43, 7  ;;  %v4370_v54 = vand.u32 15, %v4369_v38 }
 0x2e7   : > { %1472 = vst [vmem:[#allocation2 + $0x8] sm:$0xff] %v1464_v37  ;;  %v1396_v42 = vadd.f32 %v1388_v41, %v1380_v62  ;;  %v1263_v52 = vpop.f32.mrf.mxu0  ;;  %v1373_v3 = vsel %vm685_vm1, %v1359_v56, %v1360_v26 }
 0x2e8   : > { %v1465_v58 = vmax.f32 %v1457_v53, %v1443_v49  ;;  %v1419_v35 = vrot.slane %v1403_v5, 1  ;;  %v1435_v10 = vrot.slane %v1403_v5, 2  ;;  %v1344_v61 = vsel %vm1086_vm3, %v1340_v33, %v1341_v39 }
 0x2e9   : > { %v1404_v59 = vadd.f32 %v3495_v44, %v1396_v42  ;;  %v1357_v63 = vsel %vm3452_vm8, %v3408_v50, %v1344_v61  ;;  %v1265_v15 = vpop.f32.mrf.mxu0  ;;  %vm3710_vm14 = vcmp.eq.s32.totalorder %v4370_v54, 12  ;;  %v4374_v49 = vand.u32 15, %v4373_v55  ;;  %v3776_v54 = vld [vmem:[#allocation3 + $0xa8] ss:$12 sps:$4 sm:$0xff]   ;;  %v3843_v55 = vld [vmem:[#allocation3 + $0x4] ss:$12 sps:$4 sm:$0xff]  }
 0x2ea   : > { %1473 = vst [vmem:[#allocation2 + $0x10] sm:$0xff] %v1465_v58  ;;  %v1426_v19 = vsel %vm685_vm1, %v1418_v46, %v1419_v35  ;;  %v1442_v21 = vsel %vm710_vm2, %v1434_v8, %v1435_v10  ;;  %v1389_v23 = vadd.f32 %v1357_v63, %v1263_v52  ;;  %v1342_v24 = vrot.slane %v1265_v15, 7  ;;  %v3849_v42 = vld [vmem:[#allocation3] ss:$12 sps:$4 sm:$0xff]  }
 0x2eb   : > { %v1450_v18 = vsel %vm3672_vm13, 0.0, %v1442_v21  ;;  %v1458_v16 = vmax.f32 %v1402_v22, %v1426_v19  ;;  %v1420_v27 = vrot.slane %v1404_v59, 1  ;;  %v1436_v2 = vrot.slane %v1404_v59, 2  ;;  %v1267_v28 = vpop.f32.mrf.mxu0 }
 0x2ec   : > { %v1397_v29 = vadd.f32 %v1389_v23, %v1367_v11  ;;  %v1350_v30 = vsel %vm1086_vm3, %v1342_v24, %v1335_v20  ;;  %v1343_v31 = vsel %vm1086_vm3, %v1341_v39, %v1342_v24  ;;  %vm3733_vm15 = vcmp.eq.s32.totalorder %v4374_v49, 12  ;;  %v3785_v20 = vld [vmem:[#allocation3 + $0x98] ss:$12 sps:$4 sm:$0xff]   ;;  %v3846_v49 = vld [vmem:[#allocation3 + $0x8] ss:$12 sps:$4 sm:$0xff]  }
 0x2ed   : > { %v1466_v33 = vmax.f32 %v1458_v16, %v1450_v18  ;;  %v1425_v34 = vsel %vm685_vm1, %v1419_v35, %v1420_v27  ;;  %v1351_v22 = vsel %vm3487_vm11, %v3408_v50, %v1350_v30  ;;  %v1390_v14 = vadd.f32 %v1343_v31, %v1267_v28 }
 0x2ee   : > { %v1459_v47 = vmax.f32 %v1403_v5, %v1425_v34  ;;  %v1405_v46 = vadd.f32 %v3495_v44, %v1397_v29  ;;  %v1383_v8 = vadd.f32 %v1351_v22, %v3590_v17  ;;  %v1441_v45 = vsel %vm710_vm2, %v1435_v10, %v1436_v2 }
 0x2ef   : > { %1474 = vst [vmem:[#allocation2 + $0x18] sm:$0xff] %v1466_v33  ;;  %v1382_v17 = vsel %vm3462_vm9, %v3428_v6, %v1374_v7  ;;  %vm2968_vm11 = vmmov 0  }
 0x2f0   : > { %v1467_v37 = vmax.f32 %v1459_v47, %v1441_v45  ;;  %v1421_v4 = vrot.slane %v1405_v46, 1  ;;  %v1437_v51 = vrot.slane %v1405_v46, 2  ;;  %v1391_v41 = vadd.f32 %v1383_v8, %v1373_v3  ;;  %v3788_v3 = vld [vmem:[#allocation3 + $0x90] ss:$12 sps:$4 sm:$0xff]  }
 0x2f1   : > { %v1398_v43 = vadd.f32 %v1390_v14, %v1382_v17  ;;  %v3792_v45 = vld [vmem:[#allocation3 + $0x7c] ss:$12 sps:$4 sm:$0xff]   ;;  %v3795_v17 = vld [vmem:[#allocation3 + $0x80] ss:$12 sps:$4 sm:$0xff]  }
 0x2f2   : > { %1475 = vst [vmem:[#allocation2 + $0x20] sm:$0xff] %v1467_v37  ;;  %v1424_v25 = vsel %vm685_vm1, %v1420_v27, %v1421_v4  ;;  %v1440_v26 = vsel %vm710_vm2, %v1436_v2, %v1437_v51  ;;  %v1399_v53 = vadd.f32 %v3495_v44, %v1391_v41  ;;  %v3799_v37 = vld [vmem:[#allocation3 + $0x78] ss:$12 sps:$4 sm:$0xff]   ;;  %v3809_v41 = vld [vmem:[#allocation3 + $0x60] ss:$12 sps:$4 sm:$0xff]  }
 0x2f3   : > { %v1452_v5 = vsel %vm3710_vm14, 0.0, %v1440_v26  ;;  %v1460_v62 = vmax.f32 %v1404_v59, %v1424_v25  ;;  %v1406_v32 = vadd.f32 %v3495_v44, %v1398_v43  ;;  %v3813_v43 = vld [vmem:[#allocation3 + $0x4c] ss:$12 sps:$4 sm:$0xff]   ;;  %v3816_v25 = vld [vmem:[#allocation3 + $0x50] ss:$12 sps:$4 sm:$0xff]  }
 0x2f4   : > { %v1431_v39 = vrot.slane %v1399_v53, 2  ;;  %v1415_v0 = vrot.slane %v1399_v53, 1  ;;  %v3819_v26 = vld [vmem:[#allocation3 + $0x48] ss:$12 sps:$4 sm:$0xff]  }
 0x2f5   : > { %v1468_v52 = vmax.f32 %v1460_v62, %v1452_v5  ;;  %v1422_v58 = vrot.slane %v1406_v32, 1  ;;  %v1438_v35 = vrot.slane %v1406_v32, 2  ;;  %v3826_v5 = vld [vmem:[#allocation3 + $0x38] ss:$12 sps:$4 sm:$0xff]   ;;  %v3829_v62 = vld [vmem:[#allocation3 + $0x30] ss:$12 sps:$4 sm:$0xff]  }
 0x2f6   : > { %v1429_v10 = vsel %vm685_vm1, %v1415_v0, %v1416_v1  ;;  %v1445_v1 = vsel %vm710_vm2, %v1431_v39, %v1432_v12  ;;  %v3755_v16 = vld [vmem:[#allocation2 + $0x10] ss:$2 sm:$0xff] }
 0x2f7   : > { %1476 = vst [vmem:[#allocation2 + $0x28] sm:$0xff] %v1468_v52  ;;  %v1423_v61 = vsel %vm685_vm1, %v1421_v4, %v1422_v58  ;;  %v1430_v56 = vsel %vm685_vm1, %v1422_v58, %v1415_v0  ;;  %v1446_v59 = vsel %vm710_vm2, %v1438_v35, %v1431_v39  ;;  %v1455_v11 = vmax.f32 %v1399_v53, %v1429_v10  ;;  %v3803_v4 = vld [vmem:[#allocation3 + $0x64] ss:$12 sps:$4 sm:$0xff]   ;;  %v3823_v53 = vld [vmem:[#allocation3 + $0x34] ss:$12 sps:$4 sm:$0xff]  }
 0x2f8   : > { %v1454_v63 = vsel %vm3733_vm15, 0.0, %v1446_v59  ;;  %v1461_v15 = vmax.f32 %v1405_v46, %v1423_v61  ;;  %v1462_v19 = vmax.f32 %v1406_v32, %v1430_v56  ;;  %v1439_v21 = vsel %vm710_vm2, %v1437_v51, %v1438_v35  ;;  %v3806_v51 = vld [vmem:[#allocation3 + $0x68] ss:$12 sps:$4 sm:$0xff]   ;;  %v3836_v39 = vld [vmem:[#allocation3 + $0x20] ss:$12 sps:$4 sm:$0xff]  }
 0x2f9   : > { %v1463_v23 = vmax.f32 %v1455_v11, %v1445_v1  ;;  %v1499_v2 = vmul.f32 %v3264_v60, %v3755_v16  ;;  %v3833_v32 = vld [vmem:[#allocation3 + $0x1c] ss:$12 sps:$4 sm:$0xff]   ;;  %v3839_v0 = vld [vmem:[#allocation3 + $0x18] ss:$12 sps:$4 sm:$0xff]   ;;  %v3857_v10 = vand.u32 7, %v4360_v36 }
 0x2fa   : > { %v1469_v24 = vmax.f32 %v1461_v15, %v1439_v21  ;;  %v1470_v18 = vmax.f32 %v1462_v19, %v1454_v63  ;;  %v3853_v52 = vld [vmem:[#allocation3 + $0xac] ss:$12 sps:$4 sm:$0xff]  }
 0x2fb   : > { %1471 = vst [vmem:[#allocation2] sm:$0xff] %v1463_v23  ;;  %v1503_v29 = vadd.f32 %v3275_v9, %v1499_v2  ;;  %vm1491_vm0 = vcmp.eq.s32.totalorder %v3857_v10, 0  ;;  %v3866_v2 = vand.u32 7, %v4365_v48  ;;  %vm1495_vm4 = vcmp.eq.s32.totalorder %v3857_v10, 6 }
 0x2fc   : > { %1477 = vst [vmem:[#allocation2 + $0x30] sm:$0xff] %v1469_v24  ;;  %1478 = vst [vmem:[#allocation2 + $0x38] sm:$0xff] %v1470_v18  ;;  %v4377_v24 = vld [vmem:[#allocation17_spill] sm:$0xff]  ;;  %vm1807_vm12 = vcmp.eq.s32.totalorder %v3857_v10, 5 }
 0x2fd   : > { %v1507_v47 = vmax.f32 %v1503_v29, 0.0  ;;  %v3863_v18 = vand.u32 7, %v4377_v24  ;;  %vm1497_vm7 = vcmp.eq.s32.totalorder %v3866_v2, 6  ;;  %vm1493_vm9 = vcmp.eq.s32.totalorder %v3866_v2, 0 }
 0x2fe   : > { %v3757_v27 = vld [vmem:[#allocation2 + $0x20] ss:$2 sm:$0xff]  ;;  %vm1809_vm15 = vcmp.eq.s32.totalorder %v3866_v2, 5 }
 0x2ff   : > { %v1500_v57 = vmul.f32 %v3264_v60, %v3757_v27  ;;  %vm1492_vm5 = vcmp.eq.s32.totalorder %v3863_v18, 0  ;;  %vm1496_vm6 = vcmp.eq.s32.totalorder %v3863_v18, 6  ;;  %vm1808_vm14 = vcmp.eq.s32.totalorder %v3863_v18, 5 }
 0x301   : > { %v1504_v31 = vadd.f32 %v3275_v9, %v1500_v57 }
 0x302   : > { %v3763_v12 = vld [vmem:[#allocation2] ss:$2 sm:$0xff] }
 0x303   : > { %v3765_v28 = vld [vmem:[#allocation2 + $0x30] ss:$2 sm:$0xff]  ;;  %v1498_v7 = vmul.f32 %v3264_v60, %v3763_v12  ;;  %v1508_v46 = vmax.f32 %v1504_v31, 0.0 }
 0x304   : > { %v1501_v30 = vmul.f32 %v3264_v60, %v3765_v28  ;;  %v3779_v60 = vld [vmem:[#allocation3 + $0xb0] ss:$12 sps:$4 sm:$0xff]  }
 0x305   : > { %v1502_v33 = vadd.f32 %v3275_v9, %v1498_v7 }
 0x306   : > { %v1505_v34 = vadd.f32 %v3275_v9, %v1501_v30  ;;  %v3782_v9 = vld [vmem:[#allocation3 + $0x94] ss:$12 sps:$4 sm:$0xff]  }
 0x307   : > { %v1506_v22 = vmax.f32 %v1502_v33, 0.0 }
 0x308   : > { %v1509_v8 = vmax.f32 %v1505_v34, 0.0  ;;  %v3874_v34 = vand.u32 7, %v3240_v40 }
 0x309   : > { %v1510_v14 = vpack.c.bf16 %v1507_v47, %v1506_v22 }
 0x30a   : > { %v1511_v38 = vpack.c.bf16 %v1509_v8, %v1508_v46  ;;  %vm1490_vm8 = vcmp.eq.s32.totalorder %v3874_v34, 0  ;;  %vm1494_vm10 = vcmp.eq.s32.totalorder %v3874_v34, 6  ;;  %vm1806_vm13 = vcmp.eq.s32.totalorder %v3874_v34, 5 }
 0x30b   : > { %1545 = vmatmul.mubr.bf16.vlgmr.msra.gmra.mxu0 %v1510_v14  ;;  %2599 = vmatprep.mubr.bf16.mxu1 %v1510_v14 }
 0x30c   : > { %2600 = vmatmul.mubr.bf16.vlgmr.msra.gmra.mxu1 %v1511_v38  ;;  %1554 = vmatprep.mubr.bf16.mxu0 %v4355_v13 }
 0x30d   : > { %1665 = vmatpush1.bf16.msra.mxu0 %v3776_v54  ;;  %2604 = vmatpush3.bf16.msra.mxu1 %v3779_v60 }
 0x30e   : > { %1666 = vmatprep.subr.bf16.mxu0 %v3782_v9  ;;  %2605 = vmatprep.subr.bf16.mxu1 %v3785_v20 }
 0x311   : > { %1667 = vmatpush1.bf16.msra.mxu0 %v3788_v3  ;;  %2606 = vmatpush3.bf16.msra.mxu1 %v3785_v20 }
 0x312   : > { %1668 = vmatprep.subr.bf16.mxu0 %v3792_v45  ;;  %2607 = vmatprep.subr.bf16.mxu1 %v3795_v17 }
 0x313   : > { %1555 = vmatmul.mubr.bf16.gmra.mxu0 %v1511_v38 }
 0x314   : > { %1696 = vmatprep.mubr.bf16.mxu0 %v4355_v13 }
 0x315   : > { %1669 = vmatpush1.bf16.msra.mxu0 %v3799_v37  ;;  %2608 = vmatpush3.bf16.msra.mxu1 %v3795_v17 }
 0x316   : > { %1670 = vmatprep.subr.bf16.mxu0 %v3803_v4  ;;  %2609 = vmatprep.subr.bf16.mxu1 %v3806_v51 }
 0x319   : > { %1671 = vmatpush1.bf16.msra.mxu0 %v3809_v41  ;;  %2610 = vmatpush3.bf16.msra.mxu1 %v3806_v51 }
 0x31a   : > { %1672 = vmatprep.subr.bf16.mxu0 %v3813_v43  ;;  %2611 = vmatprep.subr.bf16.mxu1 %v3816_v25 }
 0x31d   : > { %1673 = vmatpush1.bf16.msra.mxu0 %v3819_v26  ;;  %2612 = vmatpush3.bf16.msra.mxu1 %v3816_v25 }
 0x31e   : > { %1674 = vmatprep.subr.bf16.mxu0 %v3823_v53  ;;  %2613 = vmatprep.subr.bf16.mxu1 %v3826_v5 }
 0x321   : > { %1675 = vmatpush1.bf16.msra.mxu0 %v3829_v62  ;;  %2614 = vmatpush3.bf16.msra.mxu1 %v3826_v5 }
 0x322   : > { %1676 = vmatprep.subr.bf16.mxu0 %v3833_v32  ;;  %2615 = vmatprep.subr.bf16.mxu1 %v3836_v39 }
 0x325   : > { %1677 = vmatpush1.bf16.msra.mxu0 %v3839_v0  ;;  %2616 = vmatpush3.bf16.msra.mxu1 %v3836_v39 }
 0x326   : > { %1678 = vmatprep.subr.bf16.mxu0 %v3843_v55  ;;  %2617 = vmatprep.subr.bf16.mxu1 %v3846_v49 }
 0x329   : > { %1679 = vmatpush1.bf16.msra.mxu0 %v3849_v42  ;;  %2618 = vmatpush3.bf16.msra.mxu1 %v3846_v49 }
 0x32a   : > { %1858 = vmatprep.subr.bf16.mxu0 %v3853_v52 }
 0x3cb   : > { %v1546_v58 = vpop.f32.mrf.mxu0 }
 0x3cc   : > { %v2601_v35 = vpop.f32.mrf.mxu1  ;;  %v1614_v63 = vrot.slane %v1546_v58, 7 }
 0x3cd   : > { %v1548_v61 = vpop.f32.mrf.mxu0  ;;  %v1628_v57 = vrot.slane %v2601_v35, 1 }
 0x3ce   : > { %v1599_v56 = vpop.f32.mrf.mxu1 }
 0x3cf   : > { %v1550_v59 = vpop.f32.mrf.mxu0  ;;  %v1626_v14 = vrot.slane %v1599_v56, 1 }
 0x3d0   : > { %v1615_v11 = vrot.slane %v1550_v59, 7  ;;  %v2602_v15 = vpop.f32.mrf.mxu1 }
 0x3d1   : > { %v1552_v19 = vpop.f32.mrf.mxu0  ;;  %v1629_v1 = vrot.slane %v2602_v15, 1 }
 0x3d2   : > { %v1620_v21 = vsel %vm1086_vm3, %v1614_v63, %v1615_v11  ;;  %v1602_v23 = vpop.f32.mrf.mxu1 }
 0x3d3   : > { %v1623_v7 = vsel %vm1491_vm0, %v3408_v50, %v1620_v21  ;;  %v1627_v29 = vrot.slane %v1602_v23, 1  ;;  %v1556_v30 = vpop.f32.mrf.mxu0  ;;  %v1630_v47 = vsel %vm685_vm1, %v1628_v57, %v1629_v1 }
 0x3d4   : > { %v1639_v31 = vadd.f32 %v1623_v7, %v1552_v19  ;;  %v1616_v33 = vrot.slane %v1556_v30, 7  ;;  %v1633_v19 = vsel %vm685_vm1, %v1629_v1, %v1626_v14 }
 0x3d5   : > { %v1631_v48 = vsel %vm685_vm1, %v1627_v29, %v1628_v57  ;;  %v1558_v22 = vpop.f32.mrf.mxu0  ;;  %v1632_v56 = vsel %vm685_vm1, %v1626_v14, %v1627_v29 }
 0x3d6   : > { %v1635_v46 = vsel %vm1495_vm4, %v3428_v6, %v1631_v48  ;;  %v1619_v8 = vsel %vm1086_vm3, %v1615_v11, %v1616_v33  ;;  %v1636_v11 = vsel %vm1496_vm6, %v3428_v6, %v1630_v47 }
 0x3d7   : > { %v1643_v38 = vadd.f32 %v1639_v31, %v1635_v46  ;;  %v1624_v58 = vsel %vm1492_vm5, %v3408_v50, %v1619_v8  ;;  %v1560_v35 = vpop.f32.mrf.mxu0 }
 0x3d8   : > { %v1640_v59 = vadd.f32 %v1624_v58, %v1558_v22  ;;  %v1617_v15 = vrot.slane %v1560_v35, 7  ;;  %v3921_v22 = vld [vmem:[%s4285_s5] ss:$0 sm:$0xff] }
 0x3d9   : > { %v1647_v21 = vadd.f32 %v3495_v44, %v1643_v38  ;;  %v1562_v7 = vpop.f32.mrf.mxu0  ;;  %v3930_v58 = vld [vmem:[%s4286_s6] ss:$0 sm:$0xff] }
 0x3da   : > { %v1644_v23 = vadd.f32 %v1640_v59, %v1636_v11  ;;  %v1621_v24 = vsel %vm1086_vm3, %v1617_v15, %v1614_v63  ;;  %v1618_v57 = vsel %vm1086_vm3, %v1616_v33, %v1617_v15  ;;  %v1634_v63 = vsel %vm1494_vm10, %v3428_v6, %v1632_v56 }
 0x3db   : > { %v1622_v1 = vsel %vm1490_vm8, %v3408_v50, %v1621_v24  ;;  %v1625_v29 = vsel %vm1493_vm9, %v3408_v50, %v1618_v57  ;;  %v1637_v33 = vsel %vm1497_vm7, %v3428_v6, %v1633_v19  ;;  %v1651_v47 = vmul.f32 %v3921_v22, %v1647_v21 }
 0x3dc   : > { %v1648_v30 = vadd.f32 %v3495_v44, %v1644_v23  ;;  %v1638_v31 = vadd.f32 %v1622_v1, %v1548_v61  ;;  %v1641_v48 = vadd.f32 %v1625_v29, %v1562_v7  ;;  %v2967_v29 = vmov 0.0  }
 0x3dd   : > { %v1655_v35 = vadd.f32 %v3930_v58, %v1651_v47  ;;  %2623 = vmatprep.subr.bf16.mxu1 %v2967_v29 }
 0x3de   : > { %v1652_v46 = vmul.f32 %v3921_v22, %v1648_v30  ;;  %v1642_v8 = vadd.f32 %v1638_v31, %v1634_v63  ;;  %v1645_v61 = vadd.f32 %v1641_v48, %v1637_v33 }
 0x3df   : > { %v1659_v57 = vmax.f32 %v1655_v35, 0.0 }
 0x3e0   : > { %v1646_v14 = vadd.f32 %v3495_v44, %v1642_v8  ;;  %v1649_v38 = vadd.f32 %v3495_v44, %v1645_v61  ;;  %v1656_v59 = vadd.f32 %v3930_v58, %v1652_v46 }
 0x3e2   : > { %v1650_v15 = vmul.f32 %v3921_v22, %v1646_v14  ;;  %v1653_v19 = vmul.f32 %v3921_v22, %v1649_v38  ;;  %v1660_v21 = vmax.f32 %v1656_v59, 0.0 }
 0x3e4   : > { %v1657_v56 = vadd.f32 %v3930_v58, %v1653_v19  ;;  %v1654_v11 = vadd.f32 %v3930_v58, %v1650_v15 }
 0x3e6   : > { %v1661_v23 = vmax.f32 %v1657_v56, 0.0  ;;  %v1658_v24 = vmax.f32 %v1654_v11, 0.0 }
 0x3e8   : > { %v1662_v1 = vpack.c.bf16 %v1659_v57, %v1658_v24  ;;  %v1663_v7 = vpack.c.bf16 %v1661_v23, %v1660_v21 }
 0x3ea   : > { %1697 = vmatmul.mubr.bf16.vlgmr.msra.gmra.mxu0 %v1662_v1  ;;  %2619 = vmatprep.mubr.bf16.mxu1 %v1662_v1 }
 0x3eb   : > { %2620 = vmatmul.mubr.bf16.vlgmr.msra.gmra.mxu1 %v1663_v7  ;;  %1706 = vmatprep.mubr.bf16.mxu0 %v4355_v13 }
 0x3ec   : > { %1859 = vmatpush1.bf16.msra.mxu0 %v3776_v54  ;;  %2624 = vmatpush3.bf16.msra.mxu1 %v3779_v60 }
 0x3ed   : > { %1860 = vmatprep.subr.bf16.mxu0 %v3782_v9  ;;  %2625 = vmatprep.subr.bf16.mxu1 %v2967_v29 }
 0x3ee   : > { %2639 = vmatprep.mubr.msk.bf16.mxu1 %vm2968_vm11, %v2967_v29 }
 0x3f0   : > { %1861 = vmatpush1.bf16.msra.mxu0 %v3788_v3  ;;  %2626 = vmatpush3.bf16.msra.mxu1 %v3785_v20 }
 0x3f1   : > { %1862 = vmatprep.subr.bf16.mxu0 %v3792_v45  ;;  %2627 = vmatprep.subr.bf16.mxu1 %v2967_v29 }
 0x3f2   : > { %1707 = vmatmul.mubr.bf16.gmra.mxu0 %v1663_v7 }
 0x3f3   : > { %1890 = vmatprep.mubr.bf16.mxu0 %v4355_v13 }
 0x3f4   : > { %1863 = vmatpush1.bf16.msra.mxu0 %v3799_v37  ;;  %2628 = vmatpush3.bf16.msra.mxu1 %v3795_v17 }
 0x3f5   : > { %1864 = vmatprep.subr.bf16.mxu0 %v3803_v4  ;;  %2629 = vmatprep.subr.bf16.mxu1 %v2967_v29 }
 0x3f8   : > { %1865 = vmatpush1.bf16.msra.mxu0 %v3809_v41  ;;  %2630 = vmatpush3.bf16.msra.mxu1 %v3806_v51 }
 0x3f9   : > { %1866 = vmatprep.subr.bf16.mxu0 %v3813_v43  ;;  %2631 = vmatprep.subr.bf16.mxu1 %v2967_v29 }
 0x3fc   : > { %1867 = vmatpush1.bf16.msra.mxu0 %v3819_v26  ;;  %2632 = vmatpush3.bf16.msra.mxu1 %v3816_v25 }
 0x3fd   : > { %1868 = vmatprep.subr.bf16.mxu0 %v3823_v53  ;;  %2633 = vmatprep.subr.bf16.mxu1 %v2967_v29 }
 0x400   : > { %1869 = vmatpush1.bf16.msra.mxu0 %v3829_v62  ;;  %2634 = vmatpush3.bf16.msra.mxu1 %v3826_v5 }
 0x401   : > { %1870 = vmatprep.subr.bf16.mxu0 %v3833_v32  ;;  %2635 = vmatprep.subr.bf16.mxu1 %v2967_v29 }
 0x404   : > { %1871 = vmatpush1.bf16.msra.mxu0 %v3839_v0  ;;  %2636 = vmatpush3.bf16.msra.mxu1 %v3836_v39 }
 0x405   : > { %1872 = vmatprep.subr.bf16.mxu0 %v3843_v55  ;;  %2637 = vmatprep.subr.bf16.mxu1 %v2967_v29 }
 0x408   : > { %1873 = vmatpush1.bf16.msra.mxu0 %v3849_v42  ;;  %2638 = vmatpush3.bf16.msra.mxu1 %v3846_v49 }
 0x409   : > { %1967 = vmatprep.subr.bf16.mxu0 %v3853_v52  ;;  %2643 = vmatprep.subr.bf16.mxu1 %v2967_v29 }
 0x4aa   : > { %v1698_v30 = vpop.f32.mrf.mxu0 }
 0x4ab   : > { %v2621_v31 = vpop.f32.mrf.mxu1  ;;  %v1766_v47 = vrot.slane %v1698_v30, 7 }
 0x4ac   : > { %v1700_v48 = vpop.f32.mrf.mxu0  ;;  %v1780_v59 = vrot.slane %v2621_v31, 1 }
 0x4ad   : > { %v1751_v63 = vpop.f32.mrf.mxu1 }
 0x4ae   : > { %v1702_v33 = vpop.f32.mrf.mxu0  ;;  %v1778_v30 = vrot.slane %v1751_v63, 1 }
 0x4af   : > { %v1767_v46 = vrot.slane %v1702_v33, 7  ;;  %v2622_v8 = vpop.f32.mrf.mxu1 }
 0x4b0   : > { %v1704_v61 = vpop.f32.mrf.mxu0  ;;  %v1781_v14 = vrot.slane %v2622_v8, 1 }
 0x4b1   : > { %v1772_v38 = vsel %vm1086_vm3, %v1766_v47, %v1767_v46  ;;  %v1754_v35 = vpop.f32.mrf.mxu1 }
 0x4b2   : > { %v1775_v15 = vsel %vm1491_vm0, %v3408_v50, %v1772_v38  ;;  %v1779_v19 = vrot.slane %v1754_v35, 1  ;;  %v1708_v56 = vpop.f32.mrf.mxu0  ;;  %v1782_v57 = vsel %vm685_vm1, %v1780_v59, %v1781_v14  ;;  %v1785_v35 = vsel %vm685_vm1, %v1781_v14, %v1778_v30  ;;  %v4008_v14 = vld [vmem:[%s4287_s7] ss:$0 sm:$0xff] }
 0x4b3   : > { %v1791_v11 = vadd.f32 %v1775_v15, %v1704_v61  ;;  %v1768_v21 = vrot.slane %v1708_v56, 7  ;;  %v1788_v15 = vsel %vm1496_vm6, %v3428_v6, %v1782_v57 }
 0x4b4   : > { %v1783_v23 = vsel %vm685_vm1, %v1779_v19, %v1780_v59  ;;  %v1710_v24 = vpop.f32.mrf.mxu0  ;;  %v1784_v63 = vsel %vm685_vm1, %v1778_v30, %v1779_v19 }
 0x4b5   : > { %v1787_v1 = vsel %vm1495_vm4, %v3428_v6, %v1783_v23  ;;  %v1771_v7 = vsel %vm1086_vm3, %v1767_v46, %v1768_v21 }
 0x4b6   : > { %v1795_v31 = vadd.f32 %v1791_v11, %v1787_v1  ;;  %v1776_v33 = vsel %vm1492_vm5, %v3408_v50, %v1771_v7  ;;  %v1712_v8 = vpop.f32.mrf.mxu0  ;;  %v4023_v1 = vld [vmem:[%s4288_s8] ss:$0 sm:$0xff] }
 0x4b7   : > { %v1792_v61 = vadd.f32 %v1776_v33, %v1710_v24  ;;  %v1769_v38 = vrot.slane %v1712_v8, 7  ;;  %v1789_v7 = vsel %vm1497_vm7, %v4023_v1, %v1785_v35 }
 0x4b8   : > { %v1799_v59 = vadd.f32 %v3495_v44, %v1795_v31  ;;  %v1714_v24 = vpop.f32.mrf.mxu0 }
 0x4b9   : > { %v1796_v46 = vadd.f32 %v1792_v61, %v1788_v15  ;;  %v1773_v56 = vsel %vm1086_vm3, %v1769_v38, %v1766_v47  ;;  %v1770_v50 = vsel %vm1086_vm3, %v1768_v21, %v1769_v38 }
 0x4ba   : > { %v1803_v11 = vadd.f32 %v1799_v59, %v3755_v16  ;;  %v1774_v23 = vsel %vm1490_vm8, %v4008_v14, %v1773_v56  ;;  %v1777_v19 = vsel %vm1493_vm9, %v4008_v14, %v1770_v50  ;;  %v1786_v16 = vsel %vm1494_vm10, %v3428_v6, %v1784_v63 }
 0x4bb   : > { %v1800_v47 = vadd.f32 %v3495_v44, %v1796_v46  ;;  %v1790_v57 = vadd.f32 %v1774_v23, %v1700_v48  ;;  %v1793_v21 = vadd.f32 %v1777_v19, %v1714_v24 }
 0x4bc   : > { %v1811_v48 = vrot.slane %v1803_v11, 1  ;;  %v1819_v8 = vrot.slane %v1803_v11, 2 }
 0x4bd   : > { %v1804_v30 = vadd.f32 %v1800_v47, %v3757_v27  ;;  %v1794_v31 = vadd.f32 %v1790_v57, %v1786_v16  ;;  %v1797_v33 = vadd.f32 %v1793_v21, %v1789_v7 }
 0x4bf   : > { %v1812_v61 = vrot.slane %v1804_v30, 1  ;;  %v1820_v38 = vrot.slane %v1804_v30, 2  ;;  %v1798_v6 = vadd.f32 %v3495_v44, %v1794_v31  ;;  %v1801_v59 = vadd.f32 %v3495_v44, %v1797_v33 }
 0x4c1   : > { %v1815_v15 = vsel %vm685_vm1, %v1811_v48, %v1812_v61  ;;  %v1823_v35 = vsel %vm710_vm2, %v1819_v8, %v1820_v38  ;;  %v1802_v27 = vadd.f32 %v1798_v6, %v3763_v12  ;;  %v1805_v63 = vadd.f32 %v1801_v59, %v3765_v28 }
 0x4c2   : > { %v1827_v10 = vsel %vm1807_vm12, 0.0, %v1823_v35  ;;  %v1831_v46 = vmax.f32 %v1803_v11, %v1815_v15 }
 0x4c3   : > { %v1818_v56 = vrot.slane %v1802_v27, 2  ;;  %v1810_v50 = vrot.slane %v1802_v27, 1  ;;  %v1813_v23 = vrot.slane %v1805_v63, 1  ;;  %v1821_v24 = vrot.slane %v1805_v63, 2 }
 0x4c4   : > { %v1835_v44 = vmax.f32 %v1831_v46, %v1827_v10 }
 0x4c5   : > { %v1824_v19 = vsel %vm710_vm2, %v1818_v56, %v1819_v8  ;;  %v1814_v12 = vsel %vm685_vm1, %v1812_v61, %v1813_v23  ;;  %v1816_v28 = vsel %vm685_vm1, %v1810_v50, %v1811_v48  ;;  %v1817_v34 = vsel %vm685_vm1, %v1813_v23, %v1810_v50 }
 0x4c6   : > { %1839 = vst [vmem:[#allocation2 + $0x8] sm:$0xff] %v1835_v44  ;;  %v1826_v11 = vsel %vm1806_vm13, 0.0, %v1824_v19  ;;  %v1822_v18 = vsel %vm710_vm2, %v1820_v38, %v1821_v24  ;;  %v1825_v2 = vsel %vm710_vm2, %v1821_v24, %v1818_v56  ;;  %v1830_v47 = vmax.f32 %v1802_v27, %v1816_v28 }
 0x4c7   : > { %v1828_v57 = vsel %vm1808_vm14, 0.0, %v1822_v18  ;;  %v1829_v21 = vsel %vm1809_vm15, 0.0, %v1825_v2  ;;  %v1832_v16 = vmax.f32 %v1804_v30, %v1814_v12  ;;  %v1833_v7 = vmax.f32 %v1805_v63, %v1817_v34 }
 0x4c8   : > { %v1834_v31 = vmax.f32 %v1830_v47, %v1826_v11 }
 0x4c9   : > { %v1836_v33 = vmax.f32 %v1832_v16, %v1828_v57  ;;  %v1837_v8 = vmax.f32 %v1833_v7, %v1829_v21  ;;  %v4131_v57 = vld [vmem:[%s4284_s4] ss:$0 sm:$0xff] }
 0x4ca   : > { %1838 = vst [vmem:[#allocation2] sm:$0xff] %v1834_v31 }
 0x4cb   : > { %1840 = vst [vmem:[#allocation2 + $0x10] sm:$0xff] %v1836_v33  ;;  %1841 = vst [vmem:[#allocation2 + $0x18] sm:$0xff] %v1837_v8 }
 0x4d1   : > { %v4053_v48 = vld [vmem:[#allocation2] ss:$2 sm:$0xff] }
 0x4d2   : > { %v4055_v61 = vld [vmem:[#allocation2 + $0x10] ss:$2 sm:$0xff]  ;;  %v1851_v38 = vmul.f32 %v3921_v22, %v4053_v48 }
 0x4d3   : > { %v1852_v6 = vmul.f32 %v3921_v22, %v4055_v61 }
 0x4d4   : > { %v1853_v59 = vadd.f32 %v3930_v58, %v1851_v38 }
 0x4d5   : > { %v1854_v30 = vadd.f32 %v3930_v58, %v1852_v6 }
 0x4d6   : > { %v1855_v15 = vmax.f32 %v1853_v59, 0.0 }
 0x4d7   : > { %v1856_v35 = vmax.f32 %v1854_v30, 0.0 }
 0x4d9   : > { %v1857_v27 = vpack.c.bf16 %v1856_v35, %v1855_v15 }
 0x4db   : > { %1891 = vmatmul.mubr.bf16.vlgmr.msra.gmra.mxu0 %v1857_v27  ;;  %2640 = vmatmul.mubr.bf16.vlgmr.msra.gmra.mxu1 %v1857_v27 }
 0x4dc   : > { %1968 = vmatpush1.bf16.msra.mxu0 %v3776_v54  ;;  %2644 = vmatpush3.bf16.msra.mxu1 %v3779_v60 }
 0x4dd   : > { %1969 = vmatprep.subr.bf16.mxu0 %v3782_v9  ;;  %2645 = vmatprep.subr.bf16.mxu1 %v2967_v29 }
 0x4de   : > { %1999 = vmatprep.mubr.bf16.mxu0 %v4355_v13  ;;  %2659 = vmatprep.mubr.msk.bf16.mxu1 %vm2968_vm11, %v2967_v29 }
 0x4e0   : > { %1970 = vmatpush1.bf16.msra.mxu0 %v3788_v3  ;;  %2646 = vmatpush3.bf16.msra.mxu1 %v3785_v20 }
 0x4e1   : > { %1971 = vmatprep.subr.bf16.mxu0 %v3792_v45  ;;  %2647 = vmatprep.subr.bf16.mxu1 %v2967_v29 }
 0x4e4   : > { %1972 = vmatpush1.bf16.msra.mxu0 %v3799_v37  ;;  %2648 = vmatpush3.bf16.msra.mxu1 %v3795_v17  ;;  %v4099_v17 = vand.u32 3, %v3240_v40  ;;  %v2200_v40 = vld [vmem:[#allocation6 + $0x78] sm:$0xff] }
 0x4e5   : > { %1973 = vmatprep.subr.bf16.mxu0 %v3803_v4  ;;  %2649 = vmatprep.subr.bf16.mxu1 %v2967_v29 }
 0x4e6   : > { %vm1847_vm0 = vcmp.eq.s32.totalorder %v4099_v17, 0  ;;  %vm1849_vm5 = vcmp.eq.s32.totalorder %v4099_v17, 2  ;;  %vm2071_vm7 = vcmp.eq.s32.totalorder %v4099_v17, 1 }
 0x4e8   : > { %1974 = vmatpush1.bf16.msra.mxu0 %v3809_v41  ;;  %2650 = vmatpush3.bf16.msra.mxu1 %v3806_v51  ;;  %v4102_v51 = vand.u32 3, %v4360_v36 }
 0x4e9   : > { %1975 = vmatprep.subr.bf16.mxu0 %v3813_v43  ;;  %2651 = vmatprep.subr.bf16.mxu1 %v2967_v29 }
 0x4ea   : > { %vm1848_vm4 = vcmp.eq.s32.totalorder %v4102_v51, 0  ;;  %vm1850_vm6 = vcmp.eq.s32.totalorder %v4102_v51, 2 }
 0x4ec   : > { %1976 = vmatpush1.bf16.msra.mxu0 %v3819_v26  ;;  %2652 = vmatpush3.bf16.msra.mxu1 %v3816_v25 }
 0x4ed   : > { %1977 = vmatprep.subr.bf16.mxu0 %v3823_v53  ;;  %2653 = vmatprep.subr.bf16.mxu1 %v2967_v29 }
 0x4f0   : > { %1978 = vmatpush1.bf16.msra.mxu0 %v3829_v62  ;;  %2654 = vmatpush3.bf16.msra.mxu1 %v3826_v5 }
 0x4f1   : > { %1979 = vmatprep.subr.bf16.mxu0 %v3833_v32  ;;  %2655 = vmatprep.subr.bf16.mxu1 %v2967_v29 }
 0x4f4   : > { %1980 = vmatpush1.bf16.msra.mxu0 %v3839_v0  ;;  %2656 = vmatpush3.bf16.msra.mxu1 %v3836_v39 }
 0x4f5   : > { %1981 = vmatprep.subr.bf16.mxu0 %v3843_v55  ;;  %2657 = vmatprep.subr.bf16.mxu1 %v2967_v29 }
 0x4f8   : > { %1982 = vmatpush1.bf16.msra.mxu0 %v3849_v42  ;;  %2658 = vmatpush3.bf16.msra.mxu1 %v3846_v49 }
 0x4f9   : > { %2094 = vmatprep.subr.bf16.mxu0 %v3853_v52  ;;  %2141 = vmatprep.subr.bf16.mxu1 %v3853_v52 }
 0x59b   : > { %v1892_v60 = vpop.f32.mrf.mxu0  ;;  %v1935_v20 = vpop.f32.mrf.mxu1 }
 0x59c   : > { %v1942_v49 = vrot.slane %v1892_v60, 7  ;;  %v1948_v10 = vrot.slane %v1935_v20, 1 }
 0x59d   : > { %v1894_v25 = vpop.f32.mrf.mxu0  ;;  %v2641_v5 = vpop.f32.mrf.mxu1 }
 0x59f   : > { %v1896_v39 = vpop.f32.mrf.mxu0  ;;  %v1938_v63 = vpop.f32.mrf.mxu1 }
 0x5a0   : > { %v1943_v46 = vrot.slane %v1896_v39, 7  ;;  %v1949_v52 = vrot.slane %v1938_v63, 1 }
 0x5a1   : > { %v2642_v56 = vpop.f32.mrf.mxu1  ;;  %v1898_v19 = vpop.f32.mrf.mxu0 }
 0x5a2   : > { %v1945_v36 = vsel %vm1086_vm3, %v1943_v46, %v1942_v49  ;;  %v1950_v50 = vsel %vm685_vm1, %v1948_v10, %v1949_v52  ;;  %v1951_v23 = vsel %vm685_vm1, %v1949_v52, %v1948_v10  ;;  %v1944_v24 = vsel %vm1086_vm3, %v1942_v49, %v1943_v46 }
 0x5a3   : > { %v1946_v44 = vsel %vm1847_vm0, %v4008_v14, %v1945_v36  ;;  %v1947_v12 = vsel %vm1848_vm4, %v4008_v14, %v1944_v24  ;;  %v1952_v11 = vsel %vm1849_vm5, %v4023_v1, %v1950_v50  ;;  %v1953_v18 = vsel %vm1850_vm6, %v4023_v1, %v1951_v23 }
 0x5a4   : > { %v1954_v28 = vadd.f32 %v1946_v44, %v1894_v25  ;;  %v1955_v34 = vadd.f32 %v1947_v12, %v1898_v19 }
 0x5a6   : > { %v1956_v2 = vadd.f32 %v1954_v28, %v1952_v11  ;;  %v1957_v47 = vadd.f32 %v1955_v34, %v1953_v18 }
 0x5a8   : > { %v1958_v21 = vadd.f32 %v4131_v57, %v1956_v2  ;;  %v1959_v16 = vadd.f32 %v4131_v57, %v1957_v47  ;;  %v2199_v47 = vld [vmem:[#allocation6 + $0x70] sm:$0xff] }
 0x5aa   : > { %v1961_v7 = vmul.f32 %v3921_v22, %v1959_v16  ;;  %v1960_v31 = vmul.f32 %v3921_v22, %v1958_v21  ;;  %v2198_v21 = vld [vmem:[#allocation6 + $0x68] sm:$0xff]  ;;  %v2197_v16 = vld [vmem:[#allocation6 + $0x60] sm:$0xff] }
 0x5ac   : > { %v1963_v33 = vadd.f32 %v3930_v58, %v1961_v7  ;;  %v1962_v8 = vadd.f32 %v3930_v58, %v1960_v31  ;;  %v2196_v7 = vld [vmem:[#allocation6 + $0x58] sm:$0xff]  ;;  %v2195_v31 = vld [vmem:[#allocation6 + $0x50] sm:$0xff] }
 0x5ae   : > { %v1965_v38 = vmax.f32 %v1963_v33, 0.0  ;;  %v1964_v6 = vmax.f32 %v1962_v8, 0.0  ;;  %v2194_v33 = vld [vmem:[#allocation6 + $0x48] sm:$0xff]  ;;  %v2193_v8 = vld [vmem:[#allocation6 + $0x40] sm:$0xff] }
 0x5b0   : > { %v1966_v59 = vpack.c.bf16 %v1965_v38, %v1964_v6  ;;  %v2192_v38 = vld [vmem:[#allocation6 + $0x38] sm:$0xff]  ;;  %v2191_v6 = vld [vmem:[#allocation6 + $0x30] sm:$0xff] }
 0x5b2   : > { %2000 = vmatmul.mubr.bf16.vlgmr.msra.gmra.mxu0 %v1966_v59  ;;  %2660 = vmatmul.mubr.bf16.vlgmr.msra.gmra.mxu1 %v1966_v59 }
 0x5b3   : > { %2095 = vmatpush1.bf16.msra.mxu0 %v3776_v54  ;;  %2126 = vmatprep.mubr.bf16.mxu0 %v4355_v13 }
 0x5b4   : > { %2096 = vmatprep.subr.bf16.mxu0 %v3782_v9  ;;  %2142 = vmatpush1.bf16.msra.mxu1 %v3776_v54 }
 0x5b5   : > { %2143 = vmatprep.subr.bf16.mxu1 %v3782_v9  ;;  %2173 = vmatprep.mubr.bf16.mxu1 %v4355_v13 }
 0x5b7   : > { %2097 = vmatpush1.bf16.msra.mxu0 %v3788_v3 }
 0x5b8   : > { %2098 = vmatprep.subr.bf16.mxu0 %v3792_v45  ;;  %2144 = vmatpush1.bf16.msra.mxu1 %v3788_v3 }
 0x5b9   : > { %2145 = vmatprep.subr.bf16.mxu1 %v3792_v45 }
 0x5bb   : > { %2099 = vmatpush1.bf16.msra.mxu0 %v3799_v37 }
 0x5bc   : > { %2100 = vmatprep.subr.bf16.mxu0 %v3803_v4  ;;  %2146 = vmatpush1.bf16.msra.mxu1 %v3799_v37 }
 0x5bd   : > { %2147 = vmatprep.subr.bf16.mxu1 %v3803_v4 }
 0x5bf   : > { %2101 = vmatpush1.bf16.msra.mxu0 %v3809_v41 }
 0x5c0   : > { %2102 = vmatprep.subr.bf16.mxu0 %v3813_v43  ;;  %2148 = vmatpush1.bf16.msra.mxu1 %v3809_v41 }
 0x5c1   : > { %2149 = vmatprep.subr.bf16.mxu1 %v3813_v43 }
 0x5c3   : > { %2103 = vmatpush1.bf16.msra.mxu0 %v3819_v26 }
 0x5c4   : > { %2104 = vmatprep.subr.bf16.mxu0 %v3823_v53  ;;  %2150 = vmatpush1.bf16.msra.mxu1 %v3819_v26 }
 0x5c5   : > { %2151 = vmatprep.subr.bf16.mxu1 %v3823_v53 }
 0x5c7   : > { %2105 = vmatpush1.bf16.msra.mxu0 %v3829_v62 }
 0x5c8   : > { %2106 = vmatprep.subr.bf16.mxu0 %v3833_v32  ;;  %2152 = vmatpush1.bf16.msra.mxu1 %v3829_v62 }
 0x5c9   : > { %2153 = vmatprep.subr.bf16.mxu1 %v3833_v32 }
 0x5cb   : > { %2107 = vmatpush1.bf16.msra.mxu0 %v3839_v0 }
 0x5cc   : > { %2108 = vmatprep.subr.bf16.mxu0 %v3843_v55  ;;  %2154 = vmatpush1.bf16.msra.mxu1 %v3839_v0 }
 0x5cd   : > { %2155 = vmatprep.subr.bf16.mxu1 %v3843_v55 }
 0x5cf   : > { %2109 = vmatpush1.bf16.msra.mxu0 %v3849_v42 }
 0x5d0   : > { %2156 = vmatpush1.bf16.msra.mxu1 %v3849_v42  ;;  %2663 = vmatprep.subr.mxu0 %v2967_v29 }
 0x672   : > { %v2001_v13 = vpop.f32.mrf.mxu0  ;;  %v2044_v54 = vpop.f32.mrf.mxu1 }
 0x673   : > { %v2051_v4 = vrot.slane %v2001_v13, 7  ;;  %v2057_v41 = vrot.slane %v2044_v54, 1 }
 0x674   : > { %v2003_v9 = vpop.f32.mrf.mxu0  ;;  %v2661_v3 = vpop.f32.mrf.mxu1 }
 0x676   : > { %v2005_v45 = vpop.f32.mrf.mxu0  ;;  %v2047_v37 = vpop.f32.mrf.mxu1 }
 0x677   : > { %v2052_v43 = vrot.slane %v2005_v45, 7  ;;  %v2058_v26 = vrot.slane %v2047_v37, 1 }
 0x678   : > { %v2662_v53 = vpop.f32.mrf.mxu1  ;;  %v2007_v30 = vpop.f32.mrf.mxu0 }
 0x679   : > { %v2054_v62 = vsel %vm1086_vm3, %v2052_v43, %v2051_v4  ;;  %v2059_v32 = vsel %vm685_vm1, %v2057_v41, %v2058_v26  ;;  %v2060_v0 = vsel %vm685_vm1, %v2058_v26, %v2057_v41  ;;  %v2053_v55 = vsel %vm1086_vm3, %v2051_v4, %v2052_v43  ;;  %v2190_v53 = vld [vmem:[#allocation6 + $0x28] sm:$0xff] }
 0x67a   : > { %v2055_v42 = vsel %vm1847_vm0, %v4008_v14, %v2054_v62  ;;  %v2056_v15 = vsel %vm1848_vm4, %v4008_v14, %v2053_v55  ;;  %v2061_v60 = vsel %vm1849_vm5, %v4023_v1, %v2059_v32  ;;  %v2062_v20 = vsel %vm1850_vm6, %v4023_v1, %v2060_v0  ;;  %v2189_v62 = vld [vmem:[#allocation6 + $0x20] sm:$0xff]  ;;  %v2188_v32 = vld [vmem:[#allocation6 + $0x18] sm:$0xff]  ;;  %v2187_v0 = vld [vmem:[#allocation6 + $0x10] sm:$0xff] }
 0x67b   : > { %v2063_v35 = vadd.f32 %v2055_v42, %v2003_v9  ;;  %v2064_v27 = vadd.f32 %v2056_v15, %v2007_v30  ;;  %vm2072_vm3 = vcmp.eq.s32.totalorder %v4102_v51, 1 }
 0x67d   : > { %v2065_v25 = vadd.f32 %v2063_v35, %v2061_v60  ;;  %v2066_v5 = vadd.f32 %v2064_v27, %v2062_v20 }
 0x67f   : > { %v2067_v39 = vadd.f32 %v4131_v57, %v2065_v25  ;;  %v2068_v63 = vadd.f32 %v4131_v57, %v2066_v5 }
 0x681   : > { %v2069_v49 = vadd.f32 %v2067_v39, %v4053_v48  ;;  %v2070_v10 = vadd.f32 %v2068_v63, %v4055_v61 }
 0x683   : > { %v2077_v46 = vrot.slane %v2069_v49, 2  ;;  %v2073_v52 = vrot.slane %v2069_v49, 1  ;;  %v2074_v56 = vrot.slane %v2070_v10, 1  ;;  %v2078_v36 = vrot.slane %v2070_v10, 2 }
 0x685   : > { %v2075_v50 = vsel %vm685_vm1, %v2073_v52, %v2074_v56  ;;  %v2076_v23 = vsel %vm685_vm1, %v2074_v56, %v2073_v52  ;;  %v2079_v24 = vsel %vm710_vm2, %v2077_v46, %v2078_v36  ;;  %v2080_v48 = vsel %vm710_vm2, %v2078_v36, %v2077_v46 }
 0x686   : > { %v2081_v61 = vsel %vm2071_vm7, 0.0, %v2079_v24  ;;  %v2082_v51 = vsel %vm2072_vm3, 0.0, %v2080_v48  ;;  %v2083_v44 = vmax.f32 %v2069_v49, %v2075_v50  ;;  %v2084_v17 = vmax.f32 %v2070_v10, %v2076_v23 }
 0x688   : > { %v2085_v19 = vmax.f32 %v2083_v44, %v2081_v61  ;;  %v2086_v12 = vmax.f32 %v2084_v17, %v2082_v51 }
 0x68a   : > { %2087 = vst [vmem:[#allocation2] sm:$0xff] %v2085_v19  ;;  %2088 = vst [vmem:[#allocation2 + $0x8] sm:$0xff] %v2086_v12 }
 0x691   : > { %v4206_v28 = vld [vmem:[#allocation2] ss:$2 sm:$0xff] }
 0x692   : > { %v2090_v34 = vmul.f32 %v3921_v22, %v4206_v28 }
 0x694   : > { %v2091_v11 = vadd.f32 %v3930_v58, %v2090_v34 }
 0x696   : > { %v2092_v18 = vmax.f32 %v2091_v11, 0.0 }
 0x698   : > { %v2093_v2 = vpack.c.bf16 %v2092_v18, %v2092_v18 }
 0x69a   : > { %2127 = vmatmul.mubr.bf16.vlgmr.msra.gmra.mxu0 %v2093_v2 }
 0x69b   : > { %2695 = vmatprep.mubr.msk.f32.mxu0 %vm2968_vm11, %v2967_v29  ;;  %2664 = vmatpush3.msra.mxu0 %v2200_v40 }
 0x69c   : > { %2665 = vmatprep.subr.mxu0 %v2967_v29 }
 0x69d   : > { %2666 = vmatpush3.msra.mxu0 %v2199_v47 }
 0x69e   : > { %2667 = vmatprep.subr.mxu0 %v2967_v29 }
 0x69f   : > { %2668 = vmatpush3.msra.mxu0 %v2198_v21 }
 0x6a0   : > { %2669 = vmatprep.subr.mxu0 %v2967_v29 }
 0x6a1   : > { %2670 = vmatpush3.msra.mxu0 %v2197_v16 }
 0x6a2   : > { %2671 = vmatprep.subr.mxu0 %v2967_v29 }
 0x6a3   : > { %2672 = vmatpush3.msra.mxu0 %v2196_v7 }
 0x6a4   : > { %2673 = vmatprep.subr.mxu0 %v2967_v29 }
 0x6a5   : > { %2674 = vmatpush3.msra.mxu0 %v2195_v31 }
 0x6a6   : > { %2675 = vmatprep.subr.mxu0 %v2967_v29 }
 0x6a7   : > { %2676 = vmatpush3.msra.mxu0 %v2194_v33 }
 0x6a8   : > { %2677 = vmatprep.subr.mxu0 %v2967_v29 }
 0x6a9   : > { %2678 = vmatpush3.msra.mxu0 %v2193_v8 }
 0x6aa   : > { %2679 = vmatprep.subr.mxu0 %v2967_v29 }
 0x6ab   : > { %2680 = vmatpush3.msra.mxu0 %v2192_v38 }
 0x6ac   : > { %2681 = vmatprep.subr.mxu0 %v2967_v29 }
 0x6ad   : > { %2682 = vmatpush3.msra.mxu0 %v2191_v6 }
 0x6ae   : > { %2683 = vmatprep.subr.mxu0 %v2967_v29 }
 0x6af   : > { %2684 = vmatpush3.msra.mxu0 %v2190_v53 }
 0x6b0   : > { %2685 = vmatprep.subr.mxu0 %v2967_v29 }
 0x6b1   : > { %2686 = vmatpush3.msra.mxu0 %v2189_v62 }
 0x6b2   : > { %2687 = vmatprep.subr.mxu0 %v2967_v29 }
 0x6b3   : > { %2688 = vmatpush3.msra.mxu0 %v2188_v32 }
 0x6b4   : > { %2689 = vmatprep.subr.mxu0 %v2967_v29 }
 0x6b5   : > { %2690 = vmatpush3.msra.mxu0 %v2187_v0 }
 0x6b6   : > { %2691 = vmatprep.subr.mxu0 %v2967_v29 }
 0x75a   : > { %v2128_v59 = vpop.f32.mrf.mxu0 }
 0x75c   : > { %v2129_v13 = vpop.f32.mrf.mxu0 }
 0x75d   : > { %v2134_v54 = vadd.f32 %v4008_v14, %v2129_v13 }
 0x75e   : > { %v2131_v9 = vpop.f32.mrf.mxu0 }
 0x75f   : > { %v2135_v3 = vadd.f32 %v4023_v1, %v2134_v54 }
 0x760   : > { %v2132_v45 = vpop.f32.mrf.mxu0 }
 0x761   : > { %v2136_v37 = vadd.f32 %v4131_v57, %v2135_v3 }
 0x763   : > { %v2137_v4 = vmul.f32 %v3921_v22, %v2136_v37  ;;  %v2186_v22 = vld [vmem:[#allocation6 + $0x8] sm:$0xff] }
 0x764   : > { %2692 = vmatpush3.msra.mxu0 %v2186_v22 }
 0x765   : > { %v2138_v41 = vadd.f32 %v3930_v58, %v2137_v4  ;;  %2693 = vmatprep.subr.mxu0 %v2967_v29  ;;  %v2185_v58 = vld [vmem:[#allocation6] sm:$0xff] }
 0x766   : > { %2694 = vmatpush3.msra.mxu0 %v2185_v58  ;;  %v2433_v29 = vld [vmem:[%s4290_s10] ss:$0 sm:$0xff] }
 0x767   : > { %v2139_v43 = vmax.f32 %v2138_v41, 0.0 }
 0x769   : > { %v2140_v26 = vpack.c.bf16 %v2139_v43, %v2139_v43 }
 0x76b   : > { %2174 = vmatmul.mubr.bf16.vlgmr.msra.gmra.mxu1 %v2140_v26 }
 0x82b   : > { %v2175_v55 = vpop.f32.mrf.mxu1 }
 0x82d   : > { %v2176_v42 = vpop.f32.mrf.mxu1 }
 0x82e   : > { %v2181_v30 = vadd.f32 %v4008_v14, %v2176_v42 }
 0x82f   : > { %v2178_v15 = vpop.f32.mrf.mxu1 }
 0x830   : > { %v2182_v35 = vadd.f32 %v4023_v1, %v2181_v30 }
 0x831   : > { %v2179_v27 = vpop.f32.mrf.mxu1 }
 0x832   : > { %v2183_v60 = vadd.f32 %v4131_v57, %v2182_v35 }
 0x834   : > { %v2184_v20 = vadd.f32 %v2183_v60, %v4206_v28 }
 0x836   : > { %2696 = vmatmul.mubr.f32.vlgmr.msra.gmra.mxu0 %v2184_v20 }
 0x8f6   : > { %v2274_v14 = vpop.f32.mrf.mxu0 }
 0x8f7   : > { %v2275_v25 = vadd.f32 %v2433_v29, %v2274_v14 }
 0x8f8   : > { %v2697_v1 = vpop.f32.mrf.mxu0 }
 0x8f9   : > { %2278 = vst [vmem:[%s410_s13] sm:$0xff] %v2275_v25 }
 0x8fa   : > { %2903 = shalt.err (!%p2900_p3)
}
 0x8fb   : > { %s2904_s26 = scalar_lea.hbm %s4245_s25, 128  ;;  %s2908_s19 = scalar_lea.hbm %s4291_s11, 256 }
 0x8fc   : > { %p2905_p2 = scmp.ne.s32.totalorder %s4245_s25, %s2904_s26  ;;  %p2909_p6 = scmp.lt.s32.totalorder %s4245_s25, %s4291_s11 }
 0x8fd   : > { %p2910_p9 = scmp.lt.s32.totalorder %s2908_s19, %s2904_s26 }
 0x8fe   : > { %p2906_p4 = pnand %p2905_p2, %p3068_p5 }
 0x8ff   : > { %p2911_p12 = por %p2910_p9, %p2909_p6 }
 0x900   : > { %p2907_p13 = pneg %p2906_p4 }
 0x902   : > { %p2912_p10 = pnand %p2911_p12, %p2907_p13 }
 0x904   : > { %2915 = shalt.err (!%p2912_p10)
}
 0x905   : > { %2706 = dma.vmem_to_hbm [thread:$0]  (%p3068_p5), %s2294_s15, 128, %s4245_s25, %s2280_s30  }
 0x906 PF: > { %p2723_p7 = scmp.ge.s32.totalorder %s2958_s20, 2  ;;  %s2305_s24 = sand.u32 1, %s2946_s17  }
 0x907   : > { %p4378_p8 = scmp.ne.s32.totalorder %s4318_s28, 0  ;;  %s2306_s14 = scalar_lea.sflag [#allocation5], %s2305_s24 }
 0x909   : > { %p2716_p11 = pnand %p2723_p7, %p4378_p8 }
 0x90b   : > { %p2717_p0 = pneg %p2716_p11 }
 0x90d   : > { %2941 = dma.done.wait (%p2717_p0), %s2306_s14, 128  }
 0x90e   : > { %2943 = vsyncadd (%p2717_p0), %s2306_s14, 4294967168  ;;  %s4379_s20 = sld [smem:[#allocation13_spill]]  ;;  %s4382_s17 = smov %s2950_s18 }
 0x90f   : > { %s4380_s16 = sld [smem:[#allocation12_spill]] }
 0x910   : > { %s4381_s19 = sld [smem:[#allocation14_spill]] }
 0x914   : > { %p23_p1 = scmp.ge.s32.totalorder %s4379_s20, 4  }
 0x915   : > { %s4383_s18 = smov %s4380_s16 }
 0x916   :  { %25 = sbr.rel (!%p23_p1) target bundleno = 5 (0x5), region = 112 }
 0x91b   :  { %2311 = vsyncpa [#allocation4], 1 }
 0x91c   :  { %2313 = vsyncpa [#allocation4 + $0x1], 1 }
 0x91d   :  { %2314 = vsyncpa [#allocation7], 1 }
 0x91e   :  { %2315 = vsyncpa [#allocation5], 1 }
 0x91f   :  { %2317 = vsyncpa [#allocation5 + $0x1], 1 }

</bundles_post_ra>
